<compile_context>
chip_gen: v7x
topology: tpu7x:2x2x1
jax: 0.10.0
libtpu: 0.0.40
codegen_flags: <defaults>
</compile_context>

<pallas_src>
import functools
import numpy as np
import jax
import jax.numpy as jnp
from jax.experimental import pallas as pl
from jax.experimental.pallas import tpu as pltpu


# ----------------------------- Pallas kernel ------------------------------- #
def _center3d_kernel(xprep_ref, mask_ref, w1_ref, s1_ref, b1_ref,
                     w2_ref, s2_ref, b2_ref, wd_ref, bd_ref,
                     out_ref, p1_ref, p2_ref, *, Do, Ho):
    P = Ho + 2            # padded H rows per depth slab
    M = Do * P            # batched matmul M dimension (includes 2 junk rows/slab)
    R = (Do + 2) * P + 2  # scratch rows (zero halos + slack for junk-row taps)

    # --- restore the never-overwritten row halos (tiny; done every step) ----
    z1 = jnp.zeros((P + 1, p1_ref.shape[1]), p1_ref.dtype)
    p1_ref[0:P + 1, :] = z1
    p1_ref[P + 1 + M:R, :] = z1
    z2 = jnp.zeros((P + 1, p2_ref.shape[1]), p2_ref.dtype)
    p2_ref[0:P + 1, :] = z2
    p2_ref[P + 1 + M:R, :] = z2

    # --- MaxPool3d(2): elementwise max over the 8 pre-gathered candidates ---
    pooled = xprep_ref[0]
    for k in range(1, 8):
        pooled = jnp.maximum(pooled, xprep_ref[k])
    # xprep already carries zero H-padding rows and zero W-halo lanes, so this
    # single full-lane store also writes every interior padding row of p1.
    p1_ref[P + 1:P + 1 + M, :] = pooled                    # (M, (Wo+2)*Cin)

    mask = mask_ref[...]                                   # (M, 1) 1.0 on valid rows
    s1 = s1_ref[...]; b1 = b1_ref[...]
    s2 = s2_ref[...]; b2 = b2_ref[...]
    bd = bd_ref[...]

    # --- Conv3d(Cin->Cmid, k=3, pad=1) + BN1 + ReLU : 9 batched MXU matmuls --
    acc = jnp.dot(p1_ref[0:M, :], w1_ref[0, 0],
                  preferred_element_type=jnp.float32)
    for kd in range(3):
        for kh in range(3):
            if kd == 0 and kh == 0:
                continue
            off = kd * P + kh
            acc = acc + jnp.dot(p1_ref[off:off + M, :], w1_ref[kd, kh],
                                preferred_element_type=jnp.float32)
    # banded w1 has zero columns at the W halo, b1 is zero there, and the row
    # mask zeroes the junk H rows, so this one store also restores every
    # interior padding row of p2.
    y1 = jnp.maximum(acc * s1 + b1, 0.0) * mask            # (M, (Wo+2)*Cmid)
    p2_ref[P + 1:P + 1 + M, :] = y1.astype(p2_ref.dtype)

    # --- Conv3d(Cmid->Cout, k=3, pad=1) + BN2 + ReLU -------------------------
    acc2 = jnp.dot(p2_ref[0:M, :], w2_ref[0, 0],
                   preferred_element_type=jnp.float32)
    for kd in range(3):
        for kh in range(3):
            if kd == 0 and kh == 0:
                continue
            off = kd * P + kh
            acc2 = acc2 + jnp.dot(p2_ref[off:off + M, :], w2_ref[kd, kh],
                                  preferred_element_type=jnp.float32)
    x2 = jnp.maximum(acc2 * s2 + b2, 0.0)                  # (M, Wo*Cout)

    # --- ConvTranspose3d(k=2, s=2): all 8 taps fused in one lane-dense matmul
    out_ref[...] = jnp.dot(x2.astype(wd_ref.dtype), wd_ref[...],
                           preferred_element_type=jnp.float32) + bd


# ------------------------------ glue helpers ------------------------------- #
def build_conv_banded(w, Wo, out_pad=0):
    """w: (Co, Ci, Kd, Kh, Kw) -> (Kd, Kh, (Wo+Kw-1)*Ci, (Wo+2*out_pad)*Co)."""
    Co, Ci, Kd, Kh, Kw = w.shape
    Wp = Wo + Kw - 1
    sel = np.zeros((Kw, Wp, Wo), np.float32)               # static 0/1 pattern
    for kw in range(Kw):
        for wo in range(Wo):
            sel[kw, wo + kw, wo] = 1.0
    m = jnp.einsum('kvw,ocdhk->dhvcwo', jnp.asarray(sel), w)
    m = m.reshape(Kd, Kh, Wp * Ci, Wo * Co)
    if out_pad:
        m = jnp.pad(m, ((0, 0), (0, 0), (0, 0), (out_pad * Co, out_pad * Co)))
    return m


def build_deconv_fused(wd, Wo):
    """wd: (Cout, Cd, 2, 2, 2) -> (Wo*Cout, 8*Wo*Cd) all 8 taps fused."""
    Co, Cd, Kd, Kh, Kw = wd.shape
    sel = np.zeros((Kw, Wo, Kw * Wo), np.float32)
    for kw in range(Kw):
        for w in range(Wo):
            sel[kw, w, 2 * w + kw] = 1.0
    f = jnp.einsum('kwv,ocijk->ijwovc', jnp.asarray(sel), wd)  # (2,2,Wo,Co,2Wo,Cd)
    f = jnp.transpose(f, (2, 3, 0, 1, 4, 5))                   # (Wo,Co,2,2,2Wo,Cd)
    return f.reshape(Wo * Co, Kd * Kh * Kw * Wo * Cd)


def fold_bn(gamma, beta, mean, var, conv_bias, Wo, w_pad=0, eps=1e-5):
    scale = gamma / jnp.sqrt(var + eps)
    shift = beta + scale * (conv_bias - mean)
    C = scale.shape[0]
    s = jnp.tile(scale, Wo + 2 * w_pad)
    b = jnp.tile(shift, Wo)
    if w_pad:
        z = jnp.zeros((w_pad * C,), jnp.float32)
        b = jnp.concatenate([z, b, z])
    return s[None, :], b[None, :]


def make_params(key, Cin, Cmid, Cout, Cd):
    ks = jax.random.split(key, 14)
    nrm = lambda k, s: 0.1 * jax.random.normal(k, s, jnp.float32)
    return dict(
        w1=nrm(ks[0], (Cmid, Cin, 3, 3, 3)), b1=nrm(ks[1], (Cmid,)),
        bn1_gamma=1.0 + nrm(ks[2], (Cmid,)), bn1_beta=nrm(ks[3], (Cmid,)),
        bn1_mean=nrm(ks[4], (Cmid,)),
        bn1_var=jax.random.uniform(ks[5], (Cmid,), jnp.float32, 0.5, 1.5),
        w2=nrm(ks[6], (Cout, Cmid, 3, 3, 3)), b2=nrm(ks[7], (Cout,)),
        bn2_gamma=1.0 + nrm(ks[8], (Cout,)), bn2_beta=nrm(ks[9], (Cout,)),
        bn2_mean=nrm(ks[10], (Cout,)),
        bn2_var=jax.random.uniform(ks[11], (Cout,), jnp.float32, 0.5, 1.5),
        wd=nrm(ks[12], (Cout, Cd, 2, 2, 2)), bd=nrm(ks[13], (Cd,)),
    )


# ------------------------------ forward pass ------------------------------- #
def center3d_forward(x, params, compute_dtype=jnp.float32):
    N, Cin, D, H, W = x.shape
    Do, Ho, Wo = D // 2, H // 2, W // 2
    Cmid = params["w1"].shape[0]
    Cout = params["w2"].shape[0]
    Cd = params["wd"].shape[1]
    P = Ho + 2
    M = Do * P
    R = (Do + 2) * P + 2

    # glue: NCDHW -> 8 pool candidates in fused (D*Hpad, Wpad*C) layout
    xt = jnp.transpose(x, (0, 2, 3, 4, 1)).astype(compute_dtype)   # N,D,H,W,C
    xr = xt.reshape(N, Do, 2, Ho, 2, Wo, 2, Cin)
    xr = jnp.transpose(xr, (0, 2, 4, 6, 1, 3, 5, 7))               # N,2,2,2,Do,Ho,Wo,C
    xr = xr.reshape(N, 8, Do, Ho, Wo, Cin)
    xr = jnp.pad(xr, ((0, 0), (0, 0), (0, 0), (0, 2), (1, 1), (0, 0)))
    xprep = xr.reshape(N, 8, M, (Wo + 2) * Cin)

    # row-validity mask: 1.0 on rows m = d*P + h with h < Ho, else 0.0
    mask = jnp.asarray((np.arange(M) % P < Ho).astype(np.float32))[:, None]

    w1b = build_conv_banded(params["w1"], Wo, out_pad=1).astype(compute_dtype)
    w2b = build_conv_banded(params["w2"], Wo, out_pad=0).astype(compute_dtype)
    wdf = build_deconv_fused(params["wd"], Wo).astype(compute_dtype)
    s1, sh1 = fold_bn(params["bn1_gamma"], params["bn1_beta"], params["bn1_mean"],
                      params["bn1_var"], params["b1"], Wo, w_pad=1)
    s2, sh2 = fold_bn(params["bn2_gamma"], params["bn2_beta"], params["bn2_mean"],
                      params["bn2_var"], params["b2"], Wo, w_pad=0)
    bdt = jnp.tile(params["bd"], 8 * Wo)[None, :]

    kernel = functools.partial(_center3d_kernel, Do=Do, Ho=Ho)

    def full(a):
        return pl.BlockSpec(a.shape, lambda n, nd=a.ndim: (0,) * nd)

    out = pl.pallas_call(
        kernel,
        out_shape=jax.ShapeDtypeStruct((N, M, 8 * Wo * Cd), jnp.float32),
        grid=(N,),
        in_specs=[
            pl.BlockSpec((None, 8, M, (Wo + 2) * Cin), lambda n: (n, 0, 0, 0)),
            full(mask),
            full(w1b), full(s1), full(sh1),
            full(w2b), full(s2), full(sh2),
            full(wdf), full(bdt),
        ],
        out_specs=pl.BlockSpec((None, M, 8 * Wo * Cd), lambda n: (n, 0, 0)),
        scratch_shapes=[
            pltpu.VMEM((R, (Wo + 2) * Cin), compute_dtype),
            pltpu.VMEM((R, (Wo + 2) * Cmid), compute_dtype),
        ],
        compiler_params=pltpu.CompilerParams(
            dimension_semantics=("parallel",),
            vmem_limit_bytes=32 * 1024 * 1024),
    )(xprep, mask, w1b, s1, sh1, w2b, s2, sh2, wdf, bdt)

    # glue: (n, d*P+h, (kd,kh,w,kw,cd)) -> NCDHW, dropping the junk H rows
    y = out.reshape(N, Do, P, 2, 2, Wo, 2, Cd)[:, :, :Ho]
    y = jnp.transpose(y, (0, 7, 1, 3, 2, 4, 5, 6))
    return y.reshape(N, Cd, 2 * Do, 2 * Ho, 2 * Wo)


# ------------------------- pure-JAX reference ------------------------------ #
def center3d_reference(x, params, eps=1e-5):
    xp = jax.lax.reduce_window(x, -jnp.inf, jax.lax.max,
                               (1, 1, 2, 2, 2), (1, 1, 2, 2, 2), "VALID")

    def conv_bn_relu(h, w, b, g, be, m, v):
        y = jax.lax.conv_general_dilated(
            h, w, window_strides=(1, 1, 1), padding=[(1, 1)] * 3,
            dimension_numbers=("NCDHW", "OIDHW", "NCDHW"))
        y = y + b[None, :, None, None, None]
        y = (y - m[None, :, None, None, None]) / jnp.sqrt(v)[None, :, None, None, None]
        y = y * g[None, :, None, None, None] + be[None, :, None, None, None]
        return jnp.maximum(y, 0.0)

    h = conv_bn_relu(xp, params["w1"], params["b1"], params["bn1_gamma"],
                     params["bn1_beta"], params["bn1_mean"], params["bn1_var"] + eps)
    h = conv_bn_relu(h, params["w2"], params["b2"], params["bn2_gamma"],
                     params["bn2_beta"], params["bn2_mean"], params["bn2_var"] + eps)
    # ConvTranspose3d(k=2, s=2): non-overlapping scatter
    y = jnp.einsum("ncdhw,coijk->nodihjwk", h, params["wd"])
    N, Cd, Dh, _, Hh, _, Wh, _ = y.shape
    y = y.reshape(N, Cd, 2 * Dh, 2 * Hh, 2 * Wh)
    return y + params["bd"][None, :, None, None, None]


# ---------------------------------- main ----------------------------------- #
if __name__ == "__main__":
    key = jax.random.PRNGKey(0)
    kx, kp = jax.random.split(key)
    N, Cin, D, H, W = 2, 4, 8, 8, 8
    Cmid, Cout, Cd = 8, 8, 4

    x = jax.random.normal(kx, (N, Cin, D, H, W), jnp.float32)
    params = make_params(kp, Cin, Cmid, Cout, Cd)

    fwd = jax.jit(center3d_forward)          # end-to-end jittable now
    y = jax.block_until_ready(fwd(x, params))
    assert y.shape == (N, Cd, D, H, W), y.shape

    y_ref = center3d_reference(x, params)
    err = float(jnp.max(jnp.abs(y - y_ref)))
    assert err < 1e-3, f"max abs err {err}"
    print("KERNEL_OK")
</pallas_src>

<mosaic_0001>
module attributes {stable_mosaic.version = 11 : i64} {
  func.func @_center3d_kernel(%arg0: i32, %arg1: memref<1x8x24x24xf32, #tpu.memory_space<vmem>>, %arg2: memref<24x1xf32, #tpu.memory_space<vmem>>, %arg3: memref<3x3x24x48xf32, #tpu.memory_space<vmem>>, %arg4: memref<1x48xf32, #tpu.memory_space<vmem>>, %arg5: memref<1x48xf32, #tpu.memory_space<vmem>>, %arg6: memref<3x3x48x32xf32, #tpu.memory_space<vmem>>, %arg7: memref<1x32xf32, #tpu.memory_space<vmem>>, %arg8: memref<1x32xf32, #tpu.memory_space<vmem>>, %arg9: memref<32x128xf32, #tpu.memory_space<vmem>>, %arg10: memref<1x128xf32, #tpu.memory_space<vmem>>, %arg11: memref<1x24x128xf32, #tpu.memory_space<vmem>>, %arg12: memref<38x24xf32, #tpu.memory_space<vmem>>, %arg13: memref<38x48xf32, #tpu.memory_space<vmem>>) attributes {dimension_semantics = [#tpu.dimension_semantics<parallel>], iteration_bounds = array<i64: 2>, scalar_prefetch = 0 : i64, scratch_operands = 2 : i64, tpu.core_type = #tpu.core_type<tc>, window_params = [{transform_indices = @transform_0, window_bounds = array<i64: 1, 8, 24, 24>}, {pipeline_mode = #tpu.pipeline_mode<synchronous>, transform_indices = @transform_1, window_bounds = array<i64: 24, 1>}, {pipeline_mode = #tpu.pipeline_mode<synchronous>, transform_indices = @transform_2, window_bounds = array<i64: 3, 3, 24, 48>}, {pipeline_mode = #tpu.pipeline_mode<synchronous>, transform_indices = @transform_3, window_bounds = array<i64: 1, 48>}, {pipeline_mode = #tpu.pipeline_mode<synchronous>, transform_indices = @transform_4, window_bounds = array<i64: 1, 48>}, {pipeline_mode = #tpu.pipeline_mode<synchronous>, transform_indices = @transform_5, window_bounds = array<i64: 3, 3, 48, 32>}, {pipeline_mode = #tpu.pipeline_mode<synchronous>, transform_indices = @transform_6, window_bounds = array<i64: 1, 32>}, {pipeline_mode = #tpu.pipeline_mode<synchronous>, transform_indices = @transform_7, window_bounds = array<i64: 1, 32>}, {pipeline_mode = #tpu.pipeline_mode<synchronous>, transform_indices = @transform_8, window_bounds = array<i64: 32, 128>}, {pipeline_mode = #tpu.pipeline_mode<synchronous>, transform_indices = @transform_9, window_bounds = array<i64: 1, 128>}, {transform_indices = @transform_10, window_bounds = array<i64: 1, 24, 128>}]} {
    %cst = arith.constant 0.000000e+00 : f32
    %0 = vector.broadcast %cst : f32 to vector<7x24xf32>
    %c0 = arith.constant 0 : index
    %c0_0 = arith.constant 0 : index
    %1 = vector.load %arg12[%c0, %c0_0] : memref<38x24xf32, #tpu.memory_space<vmem>>, vector<7x24xf32>
    tpu.vector_store %arg12[%c0, %c0_0], %0 {strides = array<i32>} : memref<38x24xf32, #tpu.memory_space<vmem>>, vector<7x24xf32>,
    %c31 = arith.constant 31 : index
    %c0_1 = arith.constant 0 : index
    %2 = vector.load %arg12[%c31, %c0_1] : memref<38x24xf32, #tpu.memory_space<vmem>>, vector<7x24xf32>
    tpu.vector_store %arg12[%c31, %c0_1], %0 {strides = array<i32>} : memref<38x24xf32, #tpu.memory_space<vmem>>, vector<7x24xf32>,
    %cst_2 = arith.constant 0.000000e+00 : f32
    %3 = vector.broadcast %cst_2 : f32 to vector<7x48xf32>
    %c0_3 = arith.constant 0 : index
    %c0_4 = arith.constant 0 : index
    %4 = vector.load %arg13[%c0_3, %c0_4] : memref<38x48xf32, #tpu.memory_space<vmem>>, vector<7x48xf32>
    tpu.vector_store %arg13[%c0_3, %c0_4], %3 {strides = array<i32>} : memref<38x48xf32, #tpu.memory_space<vmem>>, vector<7x48xf32>,
    %c31_5 = arith.constant 31 : index
    %c0_6 = arith.constant 0 : index
    %5 = vector.load %arg13[%c31_5, %c0_6] : memref<38x48xf32, #tpu.memory_space<vmem>>, vector<7x48xf32>
    tpu.vector_store %arg13[%c31_5, %c0_6], %3 {strides = array<i32>} : memref<38x48xf32, #tpu.memory_space<vmem>>, vector<7x48xf32>,
    %c0_7 = arith.constant 0 : index
    %c0_8 = arith.constant 0 : index
    %c0_9 = arith.constant 0 : index
    %c0_10 = arith.constant 0 : index
    %6 = vector.load %arg1[%c0_7, %c0_8, %c0_9, %c0_10] : memref<1x8x24x24xf32, #tpu.memory_space<vmem>>, vector<1x1x24x24xf32>
    %7 = vector.shape_cast %6 : vector<1x1x24x24xf32> to vector<24x24xf32>
    %c0_11 = arith.constant 0 : index
    %c1 = arith.constant 1 : index
    %c0_12 = arith.constant 0 : index
    %c0_13 = arith.constant 0 : index
    %8 = vector.load %arg1[%c0_11, %c1, %c0_12, %c0_13] : memref<1x8x24x24xf32, #tpu.memory_space<vmem>>, vector<1x1x24x24xf32>
    %9 = vector.shape_cast %8 : vector<1x1x24x24xf32> to vector<24x24xf32>
    %10 = arith.maximumf %7, %9 : vector<24x24xf32>
    %c0_14 = arith.constant 0 : index
    %c2 = arith.constant 2 : index
    %c0_15 = arith.constant 0 : index
    %c0_16 = arith.constant 0 : index
    %11 = vector.load %arg1[%c0_14, %c2, %c0_15, %c0_16] : memref<1x8x24x24xf32, #tpu.memory_space<vmem>>, vector<1x1x24x24xf32>
    %12 = vector.shape_cast %11 : vector<1x1x24x24xf32> to vector<24x24xf32>
    %13 = arith.maximumf %10, %12 : vector<24x24xf32>
    %c0_17 = arith.constant 0 : index
    %c3 = arith.constant 3 : index
    %c0_18 = arith.constant 0 : index
    %c0_19 = arith.constant 0 : index
    %14 = vector.load %arg1[%c0_17, %c3, %c0_18, %c0_19] : memref<1x8x24x24xf32, #tpu.memory_space<vmem>>, vector<1x1x24x24xf32>
    %15 = vector.shape_cast %14 : vector<1x1x24x24xf32> to vector<24x24xf32>
    %16 = arith.maximumf %13, %15 : vector<24x24xf32>
    %c0_20 = arith.constant 0 : index
    %c4 = arith.constant 4 : index
    %c0_21 = arith.constant 0 : index
    %c0_22 = arith.constant 0 : index
    %17 = vector.load %arg1[%c0_20, %c4, %c0_21, %c0_22] : memref<1x8x24x24xf32, #tpu.memory_space<vmem>>, vector<1x1x24x24xf32>
    %18 = vector.shape_cast %17 : vector<1x1x24x24xf32> to vector<24x24xf32>
    %19 = arith.maximumf %16, %18 : vector<24x24xf32>
    %c0_23 = arith.constant 0 : index
    %c5 = arith.constant 5 : index
    %c0_24 = arith.constant 0 : index
    %c0_25 = arith.constant 0 : index
    %20 = vector.load %arg1[%c0_23, %c5, %c0_24, %c0_25] : memref<1x8x24x24xf32, #tpu.memory_space<vmem>>, vector<1x1x24x24xf32>
    %21 = vector.shape_cast %20 : vector<1x1x24x24xf32> to vector<24x24xf32>
    %22 = arith.maximumf %19, %21 : vector<24x24xf32>
    %c0_26 = arith.constant 0 : index
    %c6 = arith.constant 6 : index
    %c0_27 = arith.constant 0 : index
    %c0_28 = arith.constant 0 : index
    %23 = vector.load %arg1[%c0_26, %c6, %c0_27, %c0_28] : memref<1x8x24x24xf32, #tpu.memory_space<vmem>>, vector<1x1x24x24xf32>
    %24 = vector.shape_cast %23 : vector<1x1x24x24xf32> to vector<24x24xf32>
    %25 = arith.maximumf %22, %24 : vector<24x24xf32>
    %c0_29 = arith.constant 0 : index
    %c7 = arith.constant 7 : index
    %c0_30 = arith.constant 0 : index
    %c0_31 = arith.constant 0 : index
    %26 = vector.load %arg1[%c0_29, %c7, %c0_30, %c0_31] : memref<1x8x24x24xf32, #tpu.memory_space<vmem>>, vector<1x1x24x24xf32>
    %27 = vector.shape_cast %26 : vector<1x1x24x24xf32> to vector<24x24xf32>
    %28 = arith.maximumf %25, %27 : vector<24x24xf32>
    %c7_32 = arith.constant 7 : index
    %c0_33 = arith.constant 0 : index
    %29 = vector.load %arg12[%c7_32, %c0_33] : memref<38x24xf32, #tpu.memory_space<vmem>>, vector<24x24xf32>
    tpu.vector_store %arg12[%c7_32, %c0_33], %28 {strides = array<i32>} : memref<38x24xf32, #tpu.memory_space<vmem>>, vector<24x24xf32>,
    %c0_34 = arith.constant 0 : index
    %c0_35 = arith.constant 0 : index
    %30 = vector.load %arg2[%c0_34, %c0_35] : memref<24x1xf32, #tpu.memory_space<vmem>>, vector<24x1xf32>
    %c0_36 = arith.constant 0 : index
    %c0_37 = arith.constant 0 : index
    %31 = vector.load %arg4[%c0_36, %c0_37] : memref<1x48xf32, #tpu.memory_space<vmem>>, vector<1x48xf32>
    %c0_38 = arith.constant 0 : index
    %c0_39 = arith.constant 0 : index
    %32 = vector.load %arg5[%c0_38, %c0_39] : memref<1x48xf32, #tpu.memory_space<vmem>>, vector<1x48xf32>
    %c0_40 = arith.constant 0 : index
    %c0_41 = arith.constant 0 : index
    %33 = vector.load %arg7[%c0_40, %c0_41] : memref<1x32xf32, #tpu.memory_space<vmem>>, vector<1x32xf32>
    %c0_42 = arith.constant 0 : index
    %c0_43 = arith.constant 0 : index
    %34 = vector.load %arg8[%c0_42, %c0_43] : memref<1x32xf32, #tpu.memory_space<vmem>>, vector<1x32xf32>
    %c0_44 = arith.constant 0 : index
    %c0_45 = arith.constant 0 : index
    %35 = vector.load %arg10[%c0_44, %c0_45] : memref<1x128xf32, #tpu.memory_space<vmem>>, vector<1x128xf32>
    %c0_46 = arith.constant 0 : index
    %c0_47 = arith.constant 0 : index
    %36 = vector.load %arg12[%c0_46, %c0_47] : memref<38x24xf32, #tpu.memory_space<vmem>>, vector<24x24xf32>
    %c0_48 = arith.constant 0 : index
    %c0_49 = arith.constant 0 : index
    %c0_50 = arith.constant 0 : index
    %c0_51 = arith.constant 0 : index
    %37 = vector.load %arg3[%c0_48, %c0_49, %c0_50, %c0_51] : memref<3x3x24x48xf32, #tpu.memory_space<vmem>>, vector<1x1x24x48xf32>
    %38 = vector.shape_cast %37 : vector<1x1x24x48xf32> to vector<24x48xf32>
    %cst_52 = arith.constant dense<0.000000e+00> : vector<24x48xf32>
    %39 = tpu.matmul %36, %38, %cst_52 {dimension_numbers = #tpu.dot_dimension_numbers<[1], [0], [0], [1], [0, 0, 1, 1], [], []>} : vector<24x24xf32>, vector<24x48xf32>, vector<24x48xf32> -> vector<24x48xf32>
    %c1_53 = arith.constant 1 : index
    %c0_54 = arith.constant 0 : index
    %40 = vector.load %arg12[%c1_53, %c0_54] : memref<38x24xf32, #tpu.memory_space<vmem>>, vector<24x24xf32>
    %c0_55 = arith.constant 0 : index
    %c1_56 = arith.constant 1 : index
    %c0_57 = arith.constant 0 : index
    %c0_58 = arith.constant 0 : index
    %41 = vector.load %arg3[%c0_55, %c1_56, %c0_57, %c0_58] : memref<3x3x24x48xf32, #tpu.memory_space<vmem>>, vector<1x1x24x48xf32>
    %42 = vector.shape_cast %41 : vector<1x1x24x48xf32> to vector<24x48xf32>
    %cst_59 = arith.constant dense<0.000000e+00> : vector<24x48xf32>
    %43 = tpu.matmul %40, %42, %cst_59 {dimension_numbers = #tpu.dot_dimension_numbers<[1], [0], [0], [1], [0, 0, 1, 1], [], []>} : vector<24x24xf32>, vector<24x48xf32>, vector<24x48xf32> -> vector<24x48xf32>
    %44 = arith.addf %39, %43 : vector<24x48xf32>
    %c2_60 = arith.constant 2 : index
    %c0_61 = arith.constant 0 : index
    %45 = vector.load %arg12[%c2_60, %c0_61] : memref<38x24xf32, #tpu.memory_space<vmem>>, vector<24x24xf32>
    %c0_62 = arith.constant 0 : index
    %c2_63 = arith.constant 2 : index
    %c0_64 = arith.constant 0 : index
    %c0_65 = arith.constant 0 : index
    %46 = vector.load %arg3[%c0_62, %c2_63, %c0_64, %c0_65] : memref<3x3x24x48xf32, #tpu.memory_space<vmem>>, vector<1x1x24x48xf32>
    %47 = vector.shape_cast %46 : vector<1x1x24x48xf32> to vector<24x48xf32>
    %cst_66 = arith.constant dense<0.000000e+00> : vector<24x48xf32>
    %48 = tpu.matmul %45, %47, %cst_66 {dimension_numbers = #tpu.dot_dimension_numbers<[1], [0], [0], [1], [0, 0, 1, 1], [], []>} : vector<24x24xf32>, vector<24x48xf32>, vector<24x48xf32> -> vector<24x48xf32>
    %49 = arith.addf %44, %48 : vector<24x48xf32>
    %c6_67 = arith.constant 6 : index
    %c0_68 = arith.constant 0 : index
    %50 = vector.load %arg12[%c6_67, %c0_68] : memref<38x24xf32, #tpu.memory_space<vmem>>, vector<24x24xf32>
    %c1_69 = arith.constant 1 : index
    %c0_70 = arith.constant 0 : index
    %c0_71 = arith.constant 0 : index
    %c0_72 = arith.constant 0 : index
    %51 = vector.load %arg3[%c1_69, %c0_70, %c0_71, %c0_72] : memref<3x3x24x48xf32, #tpu.memory_space<vmem>>, vector<1x1x24x48xf32>
    %52 = vector.shape_cast %51 : vector<1x1x24x48xf32> to vector<24x48xf32>
    %cst_73 = arith.constant dense<0.000000e+00> : vector<24x48xf32>
    %53 = tpu.matmul %50, %52, %cst_73 {dimension_numbers = #tpu.dot_dimension_numbers<[1], [0], [0], [1], [0, 0, 1, 1], [], []>} : vector<24x24xf32>, vector<24x48xf32>, vector<24x48xf32> -> vector<24x48xf32>
    %54 = arith.addf %49, %53 : vector<24x48xf32>
    %c7_74 = arith.constant 7 : index
    %c0_75 = arith.constant 0 : index
    %55 = vector.load %arg12[%c7_74, %c0_75] : memref<38x24xf32, #tpu.memory_space<vmem>>, vector<24x24xf32>
    %c1_76 = arith.constant 1 : index
    %c1_77 = arith.constant 1 : index
    %c0_78 = arith.constant 0 : index
    %c0_79 = arith.constant 0 : index
    %56 = vector.load %arg3[%c1_76, %c1_77, %c0_78, %c0_79] : memref<3x3x24x48xf32, #tpu.memory_space<vmem>>, vector<1x1x24x48xf32>
    %57 = vector.shape_cast %56 : vector<1x1x24x48xf32> to vector<24x48xf32>
    %cst_80 = arith.constant dense<0.000000e+00> : vector<24x48xf32>
    %58 = tpu.matmul %55, %57, %cst_80 {dimension_numbers = #tpu.dot_dimension_numbers<[1], [0], [0], [1], [0, 0, 1, 1], [], []>} : vector<24x24xf32>, vector<24x48xf32>, vector<24x48xf32> -> vector<24x48xf32>
    %59 = arith.addf %54, %58 : vector<24x48xf32>
    %c8 = arith.constant 8 : index
    %c0_81 = arith.constant 0 : index
    %60 = vector.load %arg12[%c8, %c0_81] : memref<38x24xf32, #tpu.memory_space<vmem>>, vector<24x24xf32>
    %c1_82 = arith.constant 1 : index
    %c2_83 = arith.constant 2 : index
    %c0_84 = arith.constant 0 : index
    %c0_85 = arith.constant 0 : index
    %61 = vector.load %arg3[%c1_82, %c2_83, %c0_84, %c0_85] : memref<3x3x24x48xf32, #tpu.memory_space<vmem>>, vector<1x1x24x48xf32>
    %62 = vector.shape_cast %61 : vector<1x1x24x48xf32> to vector<24x48xf32>
    %cst_86 = arith.constant dense<0.000000e+00> : vector<24x48xf32>
    %63 = tpu.matmul %60, %62, %cst_86 {dimension_numbers = #tpu.dot_dimension_numbers<[1], [0], [0], [1], [0, 0, 1, 1], [], []>} : vector<24x24xf32>, vector<24x48xf32>, vector<24x48xf32> -> vector<24x48xf32>
    %64 = arith.addf %59, %63 : vector<24x48xf32>
    %c12 = arith.constant 12 : index
    %c0_87 = arith.constant 0 : index
    %65 = vector.load %arg12[%c12, %c0_87] : memref<38x24xf32, #tpu.memory_space<vmem>>, vector<24x24xf32>
    %c2_88 = arith.constant 2 : index
    %c0_89 = arith.constant 0 : index
    %c0_90 = arith.constant 0 : index
    %c0_91 = arith.constant 0 : index
    %66 = vector.load %arg3[%c2_88, %c0_89, %c0_90, %c0_91] : memref<3x3x24x48xf32, #tpu.memory_space<vmem>>, vector<1x1x24x48xf32>
    %67 = vector.shape_cast %66 : vector<1x1x24x48xf32> to vector<24x48xf32>
    %cst_92 = arith.constant dense<0.000000e+00> : vector<24x48xf32>
    %68 = tpu.matmul %65, %67, %cst_92 {dimension_numbers = #tpu.dot_dimension_numbers<[1], [0], [0], [1], [0, 0, 1, 1], [], []>} : vector<24x24xf32>, vector<24x48xf32>, vector<24x48xf32> -> vector<24x48xf32>
    %69 = arith.addf %64, %68 : vector<24x48xf32>
    %c13 = arith.constant 13 : index
    %c0_93 = arith.constant 0 : index
    %70 = vector.load %arg12[%c13, %c0_93] : memref<38x24xf32, #tpu.memory_space<vmem>>, vector<24x24xf32>
    %c2_94 = arith.constant 2 : index
    %c1_95 = arith.constant 1 : index
    %c0_96 = arith.constant 0 : index
    %c0_97 = arith.constant 0 : index
    %71 = vector.load %arg3[%c2_94, %c1_95, %c0_96, %c0_97] : memref<3x3x24x48xf32, #tpu.memory_space<vmem>>, vector<1x1x24x48xf32>
    %72 = vector.shape_cast %71 : vector<1x1x24x48xf32> to vector<24x48xf32>
    %cst_98 = arith.constant dense<0.000000e+00> : vector<24x48xf32>
    %73 = tpu.matmul %70, %72, %cst_98 {dimension_numbers = #tpu.dot_dimension_numbers<[1], [0], [0], [1], [0, 0, 1, 1], [], []>} : vector<24x24xf32>, vector<24x48xf32>, vector<24x48xf32> -> vector<24x48xf32>
    %74 = arith.addf %69, %73 : vector<24x48xf32>
    %c14 = arith.constant 14 : index
    %c0_99 = arith.constant 0 : index
    %75 = vector.load %arg12[%c14, %c0_99] : memref<38x24xf32, #tpu.memory_space<vmem>>, vector<24x24xf32>
    %c2_100 = arith.constant 2 : index
    %c2_101 = arith.constant 2 : index
    %c0_102 = arith.constant 0 : index
    %c0_103 = arith.constant 0 : index
    %76 = vector.load %arg3[%c2_100, %c2_101, %c0_102, %c0_103] : memref<3x3x24x48xf32, #tpu.memory_space<vmem>>, vector<1x1x24x48xf32>
    %77 = vector.shape_cast %76 : vector<1x1x24x48xf32> to vector<24x48xf32>
    %cst_104 = arith.constant dense<0.000000e+00> : vector<24x48xf32>
    %78 = tpu.matmul %75, %77, %cst_104 {dimension_numbers = #tpu.dot_dimension_numbers<[1], [0], [0], [1], [0, 0, 1, 1], [], []>} : vector<24x24xf32>, vector<24x48xf32>, vector<24x48xf32> -> vector<24x48xf32>
    %79 = arith.addf %74, %78 : vector<24x48xf32>
    %80 = vector.broadcast %31 : vector<1x48xf32> to vector<24x48xf32>
    %81 = arith.mulf %79, %80 : vector<24x48xf32>
    %82 = vector.broadcast %32 : vector<1x48xf32> to vector<24x48xf32>
    %83 = arith.addf %81, %82 : vector<24x48xf32>
    %cst_105 = arith.constant 0.000000e+00 : f32
    %84 = vector.broadcast %cst_105 : f32 to vector<24x48xf32>
    %85 = arith.maximumf %83, %84 : vector<24x48xf32>
    %86 = vector.broadcast %30 : vector<24x1xf32> to vector<24x48xf32>
    %87 = arith.mulf %85, %86 : vector<24x48xf32>
    %c7_106 = arith.constant 7 : index
    %c0_107 = arith.constant 0 : index
    %88 = vector.load %arg13[%c7_106, %c0_107] : memref<38x48xf32, #tpu.memory_space<vmem>>, vector<24x48xf32>
    tpu.vector_store %arg13[%c7_106, %c0_107], %87 {strides = array<i32>} : memref<38x48xf32, #tpu.memory_space<vmem>>, vector<24x48xf32>,
    %c0_108 = arith.constant 0 : index
    %c0_109 = arith.constant 0 : index
    %89 = vector.load %arg13[%c0_108, %c0_109] : memref<38x48xf32, #tpu.memory_space<vmem>>, vector<24x48xf32>
    %c0_110 = arith.constant 0 : index
    %c0_111 = arith.constant 0 : index
    %c0_112 = arith.constant 0 : index
    %c0_113 = arith.constant 0 : index
    %90 = vector.load %arg6[%c0_110, %c0_111, %c0_112, %c0_113] : memref<3x3x48x32xf32, #tpu.memory_space<vmem>>, vector<1x1x48x32xf32>
    %91 = vector.shape_cast %90 : vector<1x1x48x32xf32> to vector<48x32xf32>
    %cst_114 = arith.constant dense<0.000000e+00> : vector<24x32xf32>
    %92 = tpu.matmul %89, %91, %cst_114 {dimension_numbers = #tpu.dot_dimension_numbers<[1], [0], [0], [1], [0, 0, 1, 1], [], []>} : vector<24x48xf32>, vector<48x32xf32>, vector<24x32xf32> -> vector<24x32xf32>
    %c1_115 = arith.constant 1 : index
    %c0_116 = arith.constant 0 : index
    %93 = vector.load %arg13[%c1_115, %c0_116] : memref<38x48xf32, #tpu.memory_space<vmem>>, vector<24x48xf32>
    %c0_117 = arith.constant 0 : index
    %c1_118 = arith.constant 1 : index
    %c0_119 = arith.constant 0 : index
    %c0_120 = arith.constant 0 : index
    %94 = vector.load %arg6[%c0_117, %c1_118, %c0_119, %c0_120] : memref<3x3x48x32xf32, #tpu.memory_space<vmem>>, vector<1x1x48x32xf32>
    %95 = vector.shape_cast %94 : vector<1x1x48x32xf32> to vector<48x32xf32>
    %cst_121 = arith.constant dense<0.000000e+00> : vector<24x32xf32>
    %96 = tpu.matmul %93, %95, %cst_121 {dimension_numbers = #tpu.dot_dimension_numbers<[1], [0], [0], [1], [0, 0, 1, 1], [], []>} : vector<24x48xf32>, vector<48x32xf32>, vector<24x32xf32> -> vector<24x32xf32>
    %97 = arith.addf %92, %96 : vector<24x32xf32>
    %c2_122 = arith.constant 2 : index
    %c0_123 = arith.constant 0 : index
    %98 = vector.load %arg13[%c2_122, %c0_123] : memref<38x48xf32, #tpu.memory_space<vmem>>, vector<24x48xf32>
    %c0_124 = arith.constant 0 : index
    %c2_125 = arith.constant 2 : index
    %c0_126 = arith.constant 0 : index
    %c0_127 = arith.constant 0 : index
    %99 = vector.load %arg6[%c0_124, %c2_125, %c0_126, %c0_127] : memref<3x3x48x32xf32, #tpu.memory_space<vmem>>, vector<1x1x48x32xf32>
    %100 = vector.shape_cast %99 : vector<1x1x48x32xf32> to vector<48x32xf32>
    %cst_128 = arith.constant dense<0.000000e+00> : vector<24x32xf32>
    %101 = tpu.matmul %98, %100, %cst_128 {dimension_numbers = #tpu.dot_dimension_numbers<[1], [0], [0], [1], [0, 0, 1, 1], [], []>} : vector<24x48xf32>, vector<48x32xf32>, vector<24x32xf32> -> vector<24x32xf32>
    %102 = arith.addf %97, %101 : vector<24x32xf32>
    %c6_129 = arith.constant 6 : index
    %c0_130 = arith.constant 0 : index
    %103 = vector.load %arg13[%c6_129, %c0_130] : memref<38x48xf32, #tpu.memory_space<vmem>>, vector<24x48xf32>
    %c1_131 = arith.constant 1 : index
    %c0_132 = arith.constant 0 : index
    %c0_133 = arith.constant 0 : index
    %c0_134 = arith.constant 0 : index
    %104 = vector.load %arg6[%c1_131, %c0_132, %c0_133, %c0_134] : memref<3x3x48x32xf32, #tpu.memory_space<vmem>>, vector<1x1x48x32xf32>
    %105 = vector.shape_cast %104 : vector<1x1x48x32xf32> to vector<48x32xf32>
    %cst_135 = arith.constant dense<0.000000e+00> : vector<24x32xf32>
    %106 = tpu.matmul %103, %105, %cst_135 {dimension_numbers = #tpu.dot_dimension_numbers<[1], [0], [0], [1], [0, 0, 1, 1], [], []>} : vector<24x48xf32>, vector<48x32xf32>, vector<24x32xf32> -> vector<24x32xf32>
    %107 = arith.addf %102, %106 : vector<24x32xf32>
    %c7_136 = arith.constant 7 : index
    %c0_137 = arith.constant 0 : index
    %108 = vector.load %arg13[%c7_136, %c0_137] : memref<38x48xf32, #tpu.memory_space<vmem>>, vector<24x48xf32>
    %c1_138 = arith.constant 1 : index
    %c1_139 = arith.constant 1 : index
    %c0_140 = arith.constant 0 : index
    %c0_141 = arith.constant 0 : index
    %109 = vector.load %arg6[%c1_138, %c1_139, %c0_140, %c0_141] : memref<3x3x48x32xf32, #tpu.memory_space<vmem>>, vector<1x1x48x32xf32>
    %110 = vector.shape_cast %109 : vector<1x1x48x32xf32> to vector<48x32xf32>
    %cst_142 = arith.constant dense<0.000000e+00> : vector<24x32xf32>
    %111 = tpu.matmul %108, %110, %cst_142 {dimension_numbers = #tpu.dot_dimension_numbers<[1], [0], [0], [1], [0, 0, 1, 1], [], []>} : vector<24x48xf32>, vector<48x32xf32>, vector<24x32xf32> -> vector<24x32xf32>
    %112 = arith.addf %107, %111 : vector<24x32xf32>
    %c8_143 = arith.constant 8 : index
    %c0_144 = arith.constant 0 : index
    %113 = vector.load %arg13[%c8_143, %c0_144] : memref<38x48xf32, #tpu.memory_space<vmem>>, vector<24x48xf32>
    %c1_145 = arith.constant 1 : index
    %c2_146 = arith.constant 2 : index
    %c0_147 = arith.constant 0 : index
    %c0_148 = arith.constant 0 : index
    %114 = vector.load %arg6[%c1_145, %c2_146, %c0_147, %c0_148] : memref<3x3x48x32xf32, #tpu.memory_space<vmem>>, vector<1x1x48x32xf32>
    %115 = vector.shape_cast %114 : vector<1x1x48x32xf32> to vector<48x32xf32>
    %cst_149 = arith.constant dense<0.000000e+00> : vector<24x32xf32>
    %116 = tpu.matmul %113, %115, %cst_149 {dimension_numbers = #tpu.dot_dimension_numbers<[1], [0], [0], [1], [0, 0, 1, 1], [], []>} : vector<24x48xf32>, vector<48x32xf32>, vector<24x32xf32> -> vector<24x32xf32>
    %117 = arith.addf %112, %116 : vector<24x32xf32>
    %c12_150 = arith.constant 12 : index
    %c0_151 = arith.constant 0 : index
    %118 = vector.load %arg13[%c12_150, %c0_151] : memref<38x48xf32, #tpu.memory_space<vmem>>, vector<24x48xf32>
    %c2_152 = arith.constant 2 : index
    %c0_153 = arith.constant 0 : index
    %c0_154 = arith.constant 0 : index
    %c0_155 = arith.constant 0 : index
    %119 = vector.load %arg6[%c2_152, %c0_153, %c0_154, %c0_155] : memref<3x3x48x32xf32, #tpu.memory_space<vmem>>, vector<1x1x48x32xf32>
    %120 = vector.shape_cast %119 : vector<1x1x48x32xf32> to vector<48x32xf32>
    %cst_156 = arith.constant dense<0.000000e+00> : vector<24x32xf32>
    %121 = tpu.matmul %118, %120, %cst_156 {dimension_numbers = #tpu.dot_dimension_numbers<[1], [0], [0], [1], [0, 0, 1, 1], [], []>} : vector<24x48xf32>, vector<48x32xf32>, vector<24x32xf32> -> vector<24x32xf32>
    %122 = arith.addf %117, %121 : vector<24x32xf32>
    %c13_157 = arith.constant 13 : index
    %c0_158 = arith.constant 0 : index
    %123 = vector.load %arg13[%c13_157, %c0_158] : memref<38x48xf32, #tpu.memory_space<vmem>>, vector<24x48xf32>
    %c2_159 = arith.constant 2 : index
    %c1_160 = arith.constant 1 : index
    %c0_161 = arith.constant 0 : index
    %c0_162 = arith.constant 0 : index
    %124 = vector.load %arg6[%c2_159, %c1_160, %c0_161, %c0_162] : memref<3x3x48x32xf32, #tpu.memory_space<vmem>>, vector<1x1x48x32xf32>
    %125 = vector.shape_cast %124 : vector<1x1x48x32xf32> to vector<48x32xf32>
    %cst_163 = arith.constant dense<0.000000e+00> : vector<24x32xf32>
    %126 = tpu.matmul %123, %125, %cst_163 {dimension_numbers = #tpu.dot_dimension_numbers<[1], [0], [0], [1], [0, 0, 1, 1], [], []>} : vector<24x48xf32>, vector<48x32xf32>, vector<24x32xf32> -> vector<24x32xf32>
    %127 = arith.addf %122, %126 : vector<24x32xf32>
    %c14_164 = arith.constant 14 : index
    %c0_165 = arith.constant 0 : index
    %128 = vector.load %arg13[%c14_164, %c0_165] : memref<38x48xf32, #tpu.memory_space<vmem>>, vector<24x48xf32>
    %c2_166 = arith.constant 2 : index
    %c2_167 = arith.constant 2 : index
    %c0_168 = arith.constant 0 : index
    %c0_169 = arith.constant 0 : index
    %129 = vector.load %arg6[%c2_166, %c2_167, %c0_168, %c0_169] : memref<3x3x48x32xf32, #tpu.memory_space<vmem>>, vector<1x1x48x32xf32>
    %130 = vector.shape_cast %129 : vector<1x1x48x32xf32> to vector<48x32xf32>
    %cst_170 = arith.constant dense<0.000000e+00> : vector<24x32xf32>
    %131 = tpu.matmul %128, %130, %cst_170 {dimension_numbers = #tpu.dot_dimension_numbers<[1], [0], [0], [1], [0, 0, 1, 1], [], []>} : vector<24x48xf32>, vector<48x32xf32>, vector<24x32xf32> -> vector<24x32xf32>
    %132 = arith.addf %127, %131 : vector<24x32xf32>
    %133 = vector.broadcast %33 : vector<1x32xf32> to vector<24x32xf32>
    %134 = arith.mulf %132, %133 : vector<24x32xf32>
    %135 = vector.broadcast %34 : vector<1x32xf32> to vector<24x32xf32>
    %136 = arith.addf %134, %135 : vector<24x32xf32>
    %cst_171 = arith.constant 0.000000e+00 : f32
    %137 = vector.broadcast %cst_171 : f32 to vector<24x32xf32>
    %138 = arith.maximumf %136, %137 : vector<24x32xf32>
    %c0_172 = arith.constant 0 : index
    %c0_173 = arith.constant 0 : index
    %139 = vector.load %arg9[%c0_172, %c0_173] : memref<32x128xf32, #tpu.memory_space<vmem>>, vector<32x128xf32>
    %cst_174 = arith.constant dense<0.000000e+00> : vector<24x128xf32>
    %140 = tpu.matmul %138, %139, %cst_174 {dimension_numbers = #tpu.dot_dimension_numbers<[1], [0], [0], [1], [0, 0, 1, 1], [], []>} : vector<24x32xf32>, vector<32x128xf32>, vector<24x128xf32> -> vector<24x128xf32>
    %141 = vector.broadcast %35 : vector<1x128xf32> to vector<24x128xf32>
    %142 = arith.addf %140, %141 : vector<24x128xf32>
    %c0_175 = arith.constant 0 : index
    %c0_176 = arith.constant 0 : index
    %c0_177 = arith.constant 0 : index
    %143 = vector.load %arg11[%c0_175, %c0_176, %c0_177] : memref<1x24x128xf32, #tpu.memory_space<vmem>>, vector<1x24x128xf32>
    %144 = vector.shape_cast %143 : vector<1x24x128xf32> to vector<24x128xf32>
    %145 = vector.shape_cast %142 : vector<24x128xf32> to vector<1x24x128xf32>
    tpu.vector_store %arg11[%c0_175, %c0_176, %c0_177], %145 {strides = array<i32>} : memref<1x24x128xf32, #tpu.memory_space<vmem>>, vector<1x24x128xf32>,
    return
  }
  func.func @transform_0(%arg0: i32) -> (i32, i32, i32, i32) {
    %c0_i32 = arith.constant 0 : i32
    %c0_i32_0 = arith.constant 0 : i32
    %c0_i32_1 = arith.constant 0 : i32
    %c0_i32_2 = arith.constant 0 : i32
    return %arg0, %c0_i32, %c0_i32_0, %c0_i32_1 : i32, i32, i32, i32
  }
  func.func @transform_1(%arg0: i32) -> (i32, i32) {
    %c0_i32 = arith.constant 0 : i32
    %c0_i32_0 = arith.constant 0 : i32
    %c0_i32_1 = arith.constant 0 : i32
    return %c0_i32, %c0_i32_0 : i32, i32
  }
  func.func @transform_2(%arg0: i32) -> (i32, i32, i32, i32) {
    %c0_i32 = arith.constant 0 : i32
    %c0_i32_0 = arith.constant 0 : i32
    %c0_i32_1 = arith.constant 0 : i32
    %c0_i32_2 = arith.constant 0 : i32
    %c0_i32_3 = arith.constant 0 : i32
    return %c0_i32, %c0_i32_0, %c0_i32_1, %c0_i32_2 : i32, i32, i32, i32
  }
  func.func @transform_3(%arg0: i32) -> (i32, i32) {
    %c0_i32 = arith.constant 0 : i32
    %c0_i32_0 = arith.constant 0 : i32
    %c0_i32_1 = arith.constant 0 : i32
    return %c0_i32, %c0_i32_0 : i32, i32
  }
  func.func @transform_4(%arg0: i32) -> (i32, i32) {
    %c0_i32 = arith.constant 0 : i32
    %c0_i32_0 = arith.constant 0 : i32
    %c0_i32_1 = arith.constant 0 : i32
    return %c0_i32, %c0_i32_0 : i32, i32
  }
  func.func @transform_5(%arg0: i32) -> (i32, i32, i32, i32) {
    %c0_i32 = arith.constant 0 : i32
    %c0_i32_0 = arith.constant 0 : i32
    %c0_i32_1 = arith.constant 0 : i32
    %c0_i32_2 = arith.constant 0 : i32
    %c0_i32_3 = arith.constant 0 : i32
    return %c0_i32, %c0_i32_0, %c0_i32_1, %c0_i32_2 : i32, i32, i32, i32
  }
  func.func @transform_6(%arg0: i32) -> (i32, i32) {
    %c0_i32 = arith.constant 0 : i32
    %c0_i32_0 = arith.constant 0 : i32
    %c0_i32_1 = arith.constant 0 : i32
    return %c0_i32, %c0_i32_0 : i32, i32
  }
  func.func @transform_7(%arg0: i32) -> (i32, i32) {
    %c0_i32 = arith.constant 0 : i32
    %c0_i32_0 = arith.constant 0 : i32
    %c0_i32_1 = arith.constant 0 : i32
    return %c0_i32, %c0_i32_0 : i32, i32
  }
  func.func @transform_8(%arg0: i32) -> (i32, i32) {
    %c0_i32 = arith.constant 0 : i32
    %c0_i32_0 = arith.constant 0 : i32
    %c0_i32_1 = arith.constant 0 : i32
    return %c0_i32, %c0_i32_0 : i32, i32
  }
  func.func @transform_9(%arg0: i32) -> (i32, i32) {
    %c0_i32 = arith.constant 0 : i32
    %c0_i32_0 = arith.constant 0 : i32
    %c0_i32_1 = arith.constant 0 : i32
    return %c0_i32, %c0_i32_0 : i32, i32
  }
  func.func @transform_10(%arg0: i32) -> (i32, i32, i32) {
    %c0_i32 = arith.constant 0 : i32
    %c0_i32_0 = arith.constant 0 : i32
    %c0_i32_1 = arith.constant 0 : i32
    return %arg0, %c0_i32, %c0_i32_0 : i32, i32, i32
  }
}

</mosaic_0001>

<bundles_post_ra>
// kernel: tile.32
= control target key start
LH: loop header
LB: loop body
LE: loop exit
PB: predicated region body
PF: predicated region fallthrough
CT: control target
= control target key end

     0   :  { %s22_s0 = inlined_call_operand.vmem [shape: f32[8], index: 0, kind: input, shape index: {}]   ;;  %s23_s1 = inlined_call_operand.vmem [shape: f32[4,8], index: 1, kind: output, shape index: {}]  }
   0x1   :  { %v4_v0 = vld [vmem:[%s22_s0] ss:$0 sm:$0xff] }
   0x2   :  { %5 = vst [vmem:[%s23_s1] sm:$0xf] %v4_v0 }

// kernel: tile.28
= control target key start
LH: loop header
LB: loop body
LE: loop exit
PB: predicated region body
PF: predicated region fallthrough
CT: control target
= control target key end

     0   :  { %s22_s0 = inlined_call_operand.vmem [shape: f32[8], index: 0, kind: input, shape index: {}]   ;;  %s23_s1 = inlined_call_operand.vmem [shape: f32[6,8], index: 1, kind: output, shape index: {}]  }
   0x1   :  { %v4_v0 = vld [vmem:[%s22_s0] ss:$0 sm:$0xff] }
   0x2   :  { %5 = vst [vmem:[%s23_s1] sm:$0xff] %v4_v0 }

// kernel: tile.34
= control target key start
LH: loop header
LB: loop body
LE: loop exit
PB: predicated region body
PF: predicated region fallthrough
CT: control target
= control target key end

     0   :  { %s51_s10 = smov 40   ;;  %s52_s11 = smov 24   ;;  %vm3_vm0 = vcmask 64512   ;;  %vm9_vm1 = vcmask 392512   ;;  %vm15_vm2 = vcmask 326912   ;;  %vm21_vm3 = vcmask 261312   ;;  %s87_s0 = inlined_call_operand.vmem [shape: f32[6,8], index: 0, kind: input, shape index: {}]   ;;  %s88_s1 = inlined_call_operand.vmem [shape: f32[1,48], index: 1, kind: output, shape index: {}]  }
   0x1   :  { %v41_v0 = vld [vmem:[%s87_s0 + $0x5] sm:$0x1]   ;;  %v43_v1 = vld [vmem:[%s87_s0 + $0x3] sm:$0x1]   ;;  %v42_v2 = vld [vmem:[%s87_s0 + $0x4] sm:$0x1]  }
   0x2   :  { %7 = vrot.lane.b32.xlu0 %v41_v0, %s51_s10  ;;  %19 = vrot.lane.b32.xlu1 %v43_v1, %s52_s11  ;;  %v44_v3 = vld [vmem:[%s87_s0 + $0x2] sm:$0x1]   ;;  %v2_v4 = vld [vmem:[%s87_s0] sm:$0x1]   ;;  %s53_s18 = smov 32   ;;  %s54_s19 = smov 16  }
   0x3   :  { %4 = vst.msk [vmem:[#allocation0] sm:$0x1] %vm3_vm0, %v2_v4   ;;  %v45_v5 = vld [vmem:[%s87_s0 + $0x1] sm:$0x1]   ;;  %s55_s0 = smov 8   ;;  %vm27_vm4 = vcmask 195712  }
   0x4   :  { %vm33_vm5 = vcmask 130112  }
   0x6   :  { %13 = vrot.lane.b32.xlu0 %v42_v2, %s53_s18  ;;  %25 = vrot.lane.b32.xlu1 %v44_v3, %s54_s19 }
   0xa   :  { %31 = vrot.lane.b32.xlu0 %v45_v5, %s55_s0 }
  0x74   :  { %v8_v6 = vpop.permute.xlu0 %7   ;;  %v20_v7 = vpop.permute.xlu1 %19  }
  0x75   :  { %10 = vst.msk [vmem:[#allocation0] sm:$0x1] %vm9_vm1, %v8_v6  }
  0x78   :  { %v14_v8 = vpop.permute.xlu0 %13   ;;  %v26_v9 = vpop.permute.xlu1 %25  }
  0x79   :  { %16 = vst.msk [vmem:[#allocation0] sm:$0x1] %vm15_vm2, %v14_v8  }
  0x7a   :  { %22 = vst.msk [vmem:[#allocation0] sm:$0x1] %vm21_vm3, %v20_v7  }
  0x7b   :  { %28 = vst.msk [vmem:[#allocation0] sm:$0x1] %vm27_vm4, %v26_v9  }
  0x7c   :  { %v32_v10 = vpop.permute.xlu0 %31  }
  0x7d   :  { %34 = vst.msk [vmem:[#allocation0] sm:$0x1] %vm33_vm5, %v32_v10  }
  0x84   :  { %v38_v11 = vld [vmem:[#allocation0] sm:$0x1] }
  0x85   :  { %40 = vst [vmem:[%s88_s1] sm:$0x1] %v38_v11 }

// kernel: tile.33
= control target key start
LH: loop header
LB: loop body
LE: loop exit
PB: predicated region body
PF: predicated region fallthrough
CT: control target
= control target key end

     0   :  { %vm7_vm0 = vcmask 64512   ;;  %s37_s8 = smov 8   ;;  %s38_s9 = smov 16   ;;  %vm13_vm1 = vcmask 261312   ;;  %vm19_vm2 = vcmask 195712   ;;  %vm25_vm3 = vcmask 130112   ;;  %s55_s0 = inlined_call_operand.vmem [shape: f32[4,8], index: 0, kind: input, shape index: {}]   ;;  %s56_s1 = inlined_call_operand.vmem [shape: f32[32], index: 1, kind: output, shape index: {}]  }
   0x1   :  { %v4_v0 = vld [vmem:[%s55_s0] sm:$0xf]  ;;  %s36_s0 = smov 24  }
   0x2   :  { %5 = vst [vmem:[#allocation1] sm:$0xf] %v4_v0 }
   0x9   :  { %v10_v1 = vld [vmem:[#allocation1 + $0x3] sm:$0x1]   ;;  %v22_v2 = vld [vmem:[#allocation1 + $0x1] sm:$0x1]   ;;  %v6_v3 = vld [vmem:[#allocation1] sm:$0x1]  }
   0xa   :  { %11 = vrot.lane.b32.xlu0 %v10_v1, %s36_s0  ;;  %23 = vrot.lane.b32.xlu1 %v22_v2, %s37_s8  ;;  %v16_v4 = vld [vmem:[#allocation1 + $0x2] sm:$0x1]   ;;  %8 = vst.msk [vmem:[#allocation0] sm:$0x1] %vm7_vm0, %v6_v3  }
   0xe   :  { %17 = vrot.lane.b32.xlu0 %v16_v4, %s38_s9 }
  0x7c   :  { %v12_v5 = vpop.permute.xlu0 %11   ;;  %v24_v6 = vpop.permute.xlu1 %23  }
  0x7d   :  { %14 = vst.msk [vmem:[#allocation0] sm:$0x1] %vm13_vm1, %v12_v5  }
  0x80   :  { %v18_v7 = vpop.permute.xlu0 %17  }
  0x81   :  { %20 = vst.msk [vmem:[#allocation0] sm:$0x1] %vm19_vm2, %v18_v7  }
  0x82   :  { %26 = vst.msk [vmem:[#allocation0] sm:$0x1] %vm25_vm3, %v24_v6  }
  0x89   :  { %v30_v8 = vld [vmem:[#allocation0] sm:$0x1] }
  0x8a   :  { %32 = vst [vmem:[%s56_s1] sm:$0x1] %v30_v8 }

// kernel: tile.43
= control target key start
LH: loop header
LB: loop body
LE: loop exit
PB: predicated region body
PF: predicated region fallthrough
CT: control target
= control target key end

     0   :  { %vm7_vm0 = vcmask 64512   ;;  %s37_s8 = smov 8   ;;  %s38_s9 = smov 16   ;;  %vm13_vm1 = vcmask 261312   ;;  %vm19_vm2 = vcmask 195712   ;;  %vm25_vm3 = vcmask 130112   ;;  %s55_s0 = inlined_call_operand.vmem [shape: f32[4,8], index: 0, kind: input, shape index: {}]   ;;  %s56_s1 = inlined_call_operand.vmem [shape: f32[1,32], index: 1, kind: output, shape index: {}]  }
   0x1   :  { %v4_v0 = vld [vmem:[%s55_s0] sm:$0xf]  ;;  %s36_s0 = smov 24  }
   0x2   :  { %5 = vst [vmem:[#allocation1] sm:$0xf] %v4_v0 }
   0x9   :  { %v10_v1 = vld [vmem:[#allocation1 + $0x3] sm:$0x1]   ;;  %v22_v2 = vld [vmem:[#allocation1 + $0x1] sm:$0x1]   ;;  %v6_v3 = vld [vmem:[#allocation1] sm:$0x1]  }
   0xa   :  { %11 = vrot.lane.b32.xlu0 %v10_v1, %s36_s0  ;;  %23 = vrot.lane.b32.xlu1 %v22_v2, %s37_s8  ;;  %v16_v4 = vld [vmem:[#allocation1 + $0x2] sm:$0x1]   ;;  %8 = vst.msk [vmem:[#allocation0] sm:$0x1] %vm7_vm0, %v6_v3  }
   0xe   :  { %17 = vrot.lane.b32.xlu0 %v16_v4, %s38_s9 }
  0x7c   :  { %v12_v5 = vpop.permute.xlu0 %11   ;;  %v24_v6 = vpop.permute.xlu1 %23  }
  0x7d   :  { %14 = vst.msk [vmem:[#allocation0] sm:$0x1] %vm13_vm1, %v12_v5  }
  0x80   :  { %v18_v7 = vpop.permute.xlu0 %17  }
  0x81   :  { %20 = vst.msk [vmem:[#allocation0] sm:$0x1] %vm19_vm2, %v18_v7  }
  0x82   :  { %26 = vst.msk [vmem:[#allocation0] sm:$0x1] %vm25_vm3, %v24_v6  }
  0x89   :  { %v30_v8 = vld [vmem:[#allocation0] sm:$0x1] }
  0x8a   :  { %32 = vst [vmem:[%s56_s1] sm:$0x1] %v30_v8 }

// kernel: tile.48
= control target key start
LH: loop header
LB: loop body
LE: loop exit
PB: predicated region body
PF: predicated region fallthrough
CT: control target
= control target key end

     0   :  { %s40_s0 = inlined_call_operand.vmem [shape: f32[4], index: 0, kind: input, shape index: {}]   ;;  %s41_s1 = inlined_call_operand.vmem [shape: f32[32,4], index: 1, kind: output, shape index: {}]  }
   0x1   :  { %v4_v0 = vld [vmem:[%s40_s0] ss:$0 sm:$0xff] }
   0x2   :  { %5 = vst [vmem:[%s41_s1] sm:$0xff] %v4_v0  ;;  %12 = vst [vmem:[%s41_s1 + $0x8] sm:$0xff] %v4_v0 }
   0x3   :  { %13 = vst [vmem:[%s41_s1 + $0x10] sm:$0xff] %v4_v0  ;;  %14 = vst [vmem:[%s41_s1 + $0x18] sm:$0xff] %v4_v0 }

// kernel: tile.49
= control target key start
LH: loop header
LB: loop body
LE: loop exit
PB: predicated region body
PF: predicated region fallthrough
CT: control target
= control target key end

     0   :  { %s259_s10 = smov 124   ;;  %s260_s11 = smov 116   ;;  %vm3_vm0 = vcmask 31744   ;;  %vm9_vm1 = vcmask 1048544   ;;  %vm15_vm2 = vcmask 1015744   ;;  %vm21_vm3 = vcmask 982944   ;;  %s399_s0 = inlined_call_operand.vmem [shape: f32[32,4], index: 0, kind: input, shape index: {}]   ;;  %s400_s1 = inlined_call_operand.vmem [shape: f32[1,128], index: 1, kind: output, shape index: {}]  }
   0x1   :  { %v197_v0 = vld [vmem:[%s399_s0 + $0x1f] sm:$0x1]   ;;  %v199_v1 = vld [vmem:[%s399_s0 + $0x1d] sm:$0x1]   ;;  %v198_v2 = vld [vmem:[%s399_s0 + $0x1e] sm:$0x1]  }
   0x2   :  { %7 = vrot.lane.b32.xlu0 %v197_v0, %s259_s10  ;;  %19 = vrot.lane.b32.xlu1 %v199_v1, %s260_s11  ;;  %v200_v3 = vld [vmem:[%s399_s0 + $0x1c] sm:$0x1]   ;;  %s261_s16 = smov 120   ;;  %s262_s17 = smov 112   ;;  %v201_v4 = vld [vmem:[%s399_s0 + $0x1b] sm:$0x1]  }
   0x3   :  { %v202_v5 = vld [vmem:[%s399_s0 + $0x1a] sm:$0x1]   ;;  %s263_s22 = smov 108   ;;  %s264_s23 = smov 104   ;;  %v203_v6 = vld [vmem:[%s399_s0 + $0x19] sm:$0x1]  }
   0x4   :  { %v204_v7 = vld [vmem:[%s399_s0 + $0x18] sm:$0x1]   ;;  %s265_s28 = smov 100   ;;  %s266_s29 = smov 96   ;;  %v205_v8 = vld [vmem:[%s399_s0 + $0x17] sm:$0x1]  }
   0x5   :  { %v206_v9 = vld [vmem:[%s399_s0 + $0x16] sm:$0x1]   ;;  %v2_v10 = vld [vmem:[%s399_s0] sm:$0x1]   ;;  %s267_s7 = smov 92   ;;  %s268_s8 = smov 88  }
   0x6   :  { %13 = vrot.lane.b32.xlu0 %v198_v2, %s261_s16  ;;  %25 = vrot.lane.b32.xlu1 %v200_v3, %s262_s17  ;;  %4 = vst.msk [vmem:[#allocation0] sm:$0x1] %vm3_vm0, %v2_v10   ;;  %v207_v11 = vld [vmem:[%s399_s0 + $0x15] sm:$0x1]   ;;  %v208_v12 = vld [vmem:[%s399_s0 + $0x14] sm:$0x1]  }
   0x7   :  { %s269_s13 = smov 84   ;;  %s270_s14 = smov 80   ;;  %v209_v13 = vld [vmem:[%s399_s0 + $0x13] sm:$0x1]   ;;  %v210_v14 = vld [vmem:[%s399_s0 + $0x12] sm:$0x1]  }
   0x8   :  { %s271_s19 = smov 76   ;;  %s272_s20 = smov 72   ;;  %v211_v15 = vld [vmem:[%s399_s0 + $0x11] sm:$0x1]   ;;  %v212_v16 = vld [vmem:[%s399_s0 + $0x10] sm:$0x1]  }
   0x9   :  { %s273_s25 = smov 68   ;;  %s274_s26 = smov 64   ;;  %v213_v17 = vld [vmem:[%s399_s0 + $0xf] sm:$0x1]   ;;  %v214_v18 = vld [vmem:[%s399_s0 + $0xe] sm:$0x1]  }
   0xa   :  { %31 = vrot.lane.b32.xlu0 %v201_v4, %s263_s22  ;;  %37 = vrot.lane.b32.xlu1 %v202_v5, %s264_s23  ;;  %s275_s2 = smov 60   ;;  %s276_s3 = smov 56   ;;  %v215_v19 = vld [vmem:[%s399_s0 + $0xd] sm:$0x1]   ;;  %v216_v20 = vld [vmem:[%s399_s0 + $0xc] sm:$0x1]  }
   0xb   :  { %s278_s9 = smov 48   ;;  %v217_v21 = vld [vmem:[%s399_s0 + $0xb] sm:$0x1]   ;;  %v218_v22 = vld [vmem:[%s399_s0 + $0xa] sm:$0x1]   ;;  %s280_s15 = smov 40  }
   0xc   :  { %v219_v23 = vld [vmem:[%s399_s0 + $0x9] sm:$0x1]   ;;  %v220_v24 = vld [vmem:[%s399_s0 + $0x8] sm:$0x1]   ;;  %s282_s21 = smov 32   ;;  %s284_s27 = smov 24  }
   0xd   :  { %v221_v25 = vld [vmem:[%s399_s0 + $0x7] sm:$0x1]   ;;  %v222_v26 = vld [vmem:[%s399_s0 + $0x6] sm:$0x1]   ;;  %v223_v27 = vld [vmem:[%s399_s0 + $0x5] sm:$0x1]  }
   0xe   :  { %43 = vrot.lane.b32.xlu0 %v203_v6, %s265_s28  ;;  %49 = vrot.lane.b32.xlu1 %v204_v7, %s266_s29  ;;  %v224_v28 = vld [vmem:[%s399_s0 + $0x4] sm:$0x1]   ;;  %s286_s4 = smov 16   ;;  %v225_v29 = vld [vmem:[%s399_s0 + $0x3] sm:$0x1]   ;;  %s288_s10 = smov 8  }
   0xf   :  { %v226_v30 = vld [vmem:[%s399_s0 + $0x2] sm:$0x1]   ;;  %v227_v31 = vld [vmem:[%s399_s0 + $0x1] sm:$0x1]   ;;  %s289_s0 = smov 4   ;;  %vm27_vm4 = vcmask 950144  }
  0x10   :  { %vm33_vm5 = vcmask 917344   ;;  %vm39_vm6 = vcmask 884544   ;;  %vm45_vm7 = vcmask 851744   ;;  %vm51_vm8 = vcmask 818944  }
  0x11   :  { %vm57_vm9 = vcmask 786144   ;;  %vm63_vm10 = vcmask 753344   ;;  %vm69_vm11 = vcmask 720544   ;;  %vm75_vm12 = vcmask 687744  }
  0x12   :  { %55 = vrot.lane.b32.xlu0 %v205_v8, %s267_s7  ;;  %61 = vrot.lane.b32.xlu1 %v206_v9, %s268_s8  ;;  %s277_s8 = smov 52   ;;  %vm81_vm13 = vcmask 654944   ;;  %vm87_vm14 = vcmask 622144   ;;  %vm93_vm15 = vcmask 589344   ;;  %vm99_vm0 = vcmask 556544  }
  0x16   :  { %67 = vrot.lane.b32.xlu0 %v207_v11, %s269_s13  ;;  %73 = vrot.lane.b32.xlu1 %v208_v12, %s270_s14  ;;  %s279_s14 = smov 44  }
  0x1a   :  { %79 = vrot.lane.b32.xlu0 %v209_v13, %s271_s19  ;;  %85 = vrot.lane.b32.xlu1 %v210_v14, %s272_s20  ;;  %s281_s20 = smov 36  }
  0x1e   :  { %91 = vrot.lane.b32.xlu0 %v211_v15, %s273_s25  ;;  %97 = vrot.lane.b32.xlu1 %v212_v16, %s274_s26  ;;  %s283_s26 = smov 28  }
  0x22   :  { %103 = vrot.lane.b32.xlu0 %v213_v17, %s275_s2  ;;  %109 = vrot.lane.b32.xlu1 %v214_v18, %s276_s3  ;;  %s285_s3 = smov 20  }
  0x26   :  { %115 = vrot.lane.b32.xlu0 %v215_v19, %s277_s8  ;;  %121 = vrot.lane.b32.xlu1 %v216_v20, %s278_s9  ;;  %s287_s9 = smov 12  }
  0x2a   :  { %127 = vrot.lane.b32.xlu0 %v217_v21, %s279_s14  ;;  %133 = vrot.lane.b32.xlu1 %v218_v22, %s280_s15 }
  0x2e   :  { %139 = vrot.lane.b32.xlu0 %v219_v23, %s281_s20  ;;  %145 = vrot.lane.b32.xlu1 %v220_v24, %s282_s21 }
  0x32   :  { %151 = vrot.lane.b32.xlu0 %v221_v25, %s283_s26  ;;  %157 = vrot.lane.b32.xlu1 %v222_v26, %s284_s27 }
  0x36   :  { %163 = vrot.lane.b32.xlu0 %v223_v27, %s285_s3  ;;  %169 = vrot.lane.b32.xlu1 %v224_v28, %s286_s4 }
  0x3a   :  { %175 = vrot.lane.b32.xlu0 %v225_v29, %s287_s9  ;;  %181 = vrot.lane.b32.xlu1 %v226_v30, %s288_s10 }
  0x3e   :  { %187 = vrot.lane.b32.xlu0 %v227_v31, %s289_s0 }
  0x74   :  { %v8_v32 = vpop.permute.xlu0 %7   ;;  %v20_v33 = vpop.permute.xlu1 %19  }
  0x75   :  { %10 = vst.msk [vmem:[#allocation0] sm:$0x1] %vm9_vm1, %v8_v32   ;;  %vm105_vm1 = vcmask 523744  }
  0x78   :  { %v14_v34 = vpop.permute.xlu0 %13   ;;  %v26_v35 = vpop.permute.xlu1 %25  }
  0x79   :  { %16 = vst.msk [vmem:[#allocation0] sm:$0x1] %vm15_vm2, %v14_v34   ;;  %vm111_vm2 = vcmask 490944  }
  0x7a   :  { %22 = vst.msk [vmem:[#allocation0] sm:$0x1] %vm21_vm3, %v20_v33   ;;  %vm117_vm3 = vcmask 458144  }
  0x7b   :  { %28 = vst.msk [vmem:[#allocation0] sm:$0x1] %vm27_vm4, %v26_v35   ;;  %vm123_vm4 = vcmask 425344  }
  0x7c   :  { %v32_v36 = vpop.permute.xlu0 %31   ;;  %v38_v37 = vpop.permute.xlu1 %37  }
  0x7d   :  { %34 = vst.msk [vmem:[#allocation0] sm:$0x1] %vm33_vm5, %v32_v36   ;;  %vm129_vm5 = vcmask 392544  }
  0x7e   :  { %40 = vst.msk [vmem:[#allocation0] sm:$0x1] %vm39_vm6, %v38_v37   ;;  %vm135_vm6 = vcmask 359744  }
  0x80   :  { %v44_v38 = vpop.permute.xlu0 %43   ;;  %v50_v39 = vpop.permute.xlu1 %49  }
  0x81   :  { %46 = vst.msk [vmem:[#allocation0] sm:$0x1] %vm45_vm7, %v44_v38   ;;  %vm141_vm7 = vcmask 326944  }
  0x82   :  { %52 = vst.msk [vmem:[#allocation0] sm:$0x1] %vm51_vm8, %v50_v39   ;;  %vm147_vm8 = vcmask 294144  }
  0x84   :  { %v56_v40 = vpop.permute.xlu0 %55   ;;  %v62_v41 = vpop.permute.xlu1 %61  }
  0x85   :  { %58 = vst.msk [vmem:[#allocation0] sm:$0x1] %vm57_vm9, %v56_v40   ;;  %vm153_vm9 = vcmask 261344  }
  0x86   :  { %64 = vst.msk [vmem:[#allocation0] sm:$0x1] %vm63_vm10, %v62_v41   ;;  %vm159_vm10 = vcmask 228544  }
  0x88   :  { %v68_v42 = vpop.permute.xlu0 %67   ;;  %v74_v43 = vpop.permute.xlu1 %73  }
  0x89   :  { %70 = vst.msk [vmem:[#allocation0] sm:$0x1] %vm69_vm11, %v68_v42   ;;  %vm165_vm11 = vcmask 195744  }
  0x8a   :  { %76 = vst.msk [vmem:[#allocation0] sm:$0x1] %vm75_vm12, %v74_v43   ;;  %vm171_vm12 = vcmask 162944  }
  0x8c   :  { %v80_v44 = vpop.permute.xlu0 %79   ;;  %v86_v45 = vpop.permute.xlu1 %85  }
  0x8d   :  { %82 = vst.msk [vmem:[#allocation0] sm:$0x1] %vm81_vm13, %v80_v44   ;;  %vm177_vm13 = vcmask 130144  }
  0x8e   :  { %88 = vst.msk [vmem:[#allocation0] sm:$0x1] %vm87_vm14, %v86_v45   ;;  %vm183_vm14 = vcmask 97344  }
  0x90   :  { %v92_v46 = vpop.permute.xlu0 %91   ;;  %v98_v47 = vpop.permute.xlu1 %97  }
  0x91   :  { %94 = vst.msk [vmem:[#allocation0] sm:$0x1] %vm93_vm15, %v92_v46   ;;  %vm189_vm15 = vcmask 64544  }
  0x92   :  { %100 = vst.msk [vmem:[#allocation0] sm:$0x1] %vm99_vm0, %v98_v47  }
  0x94   :  { %v104_v48 = vpop.permute.xlu0 %103   ;;  %v110_v49 = vpop.permute.xlu1 %109  }
  0x95   :  { %106 = vst.msk [vmem:[#allocation0] sm:$0x1] %vm105_vm1, %v104_v48  }
  0x96   :  { %112 = vst.msk [vmem:[#allocation0] sm:$0x1] %vm111_vm2, %v110_v49  }
  0x98   :  { %v116_v50 = vpop.permute.xlu0 %115   ;;  %v122_v51 = vpop.permute.xlu1 %121  }
  0x99   :  { %118 = vst.msk [vmem:[#allocation0] sm:$0x1] %vm117_vm3, %v116_v50  }
  0x9a   :  { %124 = vst.msk [vmem:[#allocation0] sm:$0x1] %vm123_vm4, %v122_v51  }
  0x9c   :  { %v128_v52 = vpop.permute.xlu0 %127   ;;  %v134_v53 = vpop.permute.xlu1 %133  }
  0x9d   :  { %130 = vst.msk [vmem:[#allocation0] sm:$0x1] %vm129_vm5, %v128_v52  }
  0x9e   :  { %136 = vst.msk [vmem:[#allocation0] sm:$0x1] %vm135_vm6, %v134_v53  }
  0xa0   :  { %v140_v54 = vpop.permute.xlu0 %139   ;;  %v146_v55 = vpop.permute.xlu1 %145  }
  0xa1   :  { %142 = vst.msk [vmem:[#allocation0] sm:$0x1] %vm141_vm7, %v140_v54  }
  0xa2   :  { %148 = vst.msk [vmem:[#allocation0] sm:$0x1] %vm147_vm8, %v146_v55  }
  0xa4   :  { %v152_v56 = vpop.permute.xlu0 %151   ;;  %v158_v57 = vpop.permute.xlu1 %157  }
  0xa5   :  { %154 = vst.msk [vmem:[#allocation0] sm:$0x1] %vm153_vm9, %v152_v56  }
  0xa6   :  { %160 = vst.msk [vmem:[#allocation0] sm:$0x1] %vm159_vm10, %v158_v57  }
  0xa8   :  { %v164_v58 = vpop.permute.xlu0 %163   ;;  %v170_v59 = vpop.permute.xlu1 %169  }
  0xa9   :  { %166 = vst.msk [vmem:[#allocation0] sm:$0x1] %vm165_vm11, %v164_v58  }
  0xaa   :  { %172 = vst.msk [vmem:[#allocation0] sm:$0x1] %vm171_vm12, %v170_v59  }
  0xac   :  { %v176_v60 = vpop.permute.xlu0 %175   ;;  %v182_v61 = vpop.permute.xlu1 %181  }
  0xad   :  { %178 = vst.msk [vmem:[#allocation0] sm:$0x1] %vm177_vm13, %v176_v60  }
  0xae   :  { %184 = vst.msk [vmem:[#allocation0] sm:$0x1] %vm183_vm14, %v182_v61  }
  0xb0   :  { %v188_v62 = vpop.permute.xlu0 %187  }
  0xb1   :  { %190 = vst.msk [vmem:[#allocation0] sm:$0x1] %vm189_vm15, %v188_v62  }
  0xb8   :  { %v194_v63 = vld [vmem:[#allocation0] sm:$0x1] }
  0xb9   :  { %196 = vst [vmem:[%s400_s1] sm:$0x1] %v194_v63 }

// kernel: center3d_forward.1
= control target key start
LH: loop header
LB: loop body
LE: loop exit
PB: predicated region body
PF: predicated region fallthrough
CT: control target
= control target key end

     0   :  { %s3387_s13 = smov 0   ;;  %s3970_s0 = inlined_call_operand.vmem [shape: f32[2,8,24,24], index: 0, kind: input, shape index: {}]   ;;  %s3971_s1 = inlined_call_operand.vmem [shape: f32[24,1], index: 1, kind: input, shape index: {}]   ;;  %s3972_s2 = inlined_call_operand.vmem [shape: f32[3,3,24,48], index: 2, kind: input, shape index: {}]   ;;  %s3973_s3 = inlined_call_operand.vmem [shape: f32[1,48], index: 3, kind: input, shape index: {}]   ;;  %s3974_s4 = inlined_call_operand.vmem [shape: f32[1,48], index: 4, kind: input, shape index: {}]   ;;  %s3975_s5 = inlined_call_operand.vmem [shape: f32[3,3,48,32], index: 5, kind: input, shape index: {}]   ;;  %s3976_s6 = inlined_call_operand.vmem [shape: f32[1,32], index: 6, kind: input, shape index: {}]   ;;  %s3977_s7 = inlined_call_operand.vmem [shape: f32[1,32], index: 7, kind: input, shape index: {}]   ;;  %s3978_s8 = inlined_call_operand.vmem [shape: f32[32,128], index: 8, kind: input, shape index: {}]   ;;  %s3979_s9 = inlined_call_operand.vmem [shape: f32[1,128], index: 9, kind: input, shape index: {}]   ;;  %s3980_s10 = inlined_call_operand.vmem [shape: f32[2,24,128], index: 10, kind: output, shape index: {}]  }
   0x1 LB: > { %s2447_s14 = sadd.s32 4294967295, %s3326_s13   ;;  %p2451_p0 = scmp.ge.s32.totalorder %s3326_s13, 1  ;;  %s3326_s13 = sphi %s3387_s13, %s20_s13  }
   0x2   : > { %p312_p1 = scmp.lt.s32.totalorder %s3326_s13, 3 }
   0x4   : > { %p313_p2 = pnand %p2451_p0, %p312_p1 }
   0x5   : > { %v2475_v0 = vld [vmem:[%s3972_s2 + $0x18] sm:$0xff] (!%p313_p2)  ;;  %v2476_v1 = vld [vmem:[%s3972_s2 + $0x20] sm:$0xff] (!%p313_p2)  ;;  %v3328_v2 = vmov (!%p313_p2), 0.0|0.0   ;;  %vm3329_vm0 = vmmov (!%p313_p2), 0   ;;  %v3330_v4 = vmov (!%p313_p2), 0.0   ;;  %p350_p3 = scmp.lt.s32.totalorder (!%p313_p2), %s2447_s14, 1 }
   0x6   : > { %316 = sbr.rel (%p313_p2) target bundleno = 901 (0x385), region = 60  ;;  %3094 = vmatprep.subr.bf16.mxu0 (!%p313_p2), %v3328_v2  ;;  %v3095_v3 = vpack.c.bf16 (!%p313_p2), %v2476_v1, %v2475_v0  ;;  %2759 = vmatprep.mubr.msk.f32.mxu0 (!%p313_p2), %vm3329_vm0, %v3330_v4  ;;  %vm360_vm1 = vcmask (!%p313_p2), 194560   ;;  %v2477_v5 = vld [vmem:[%s3972_s2 + $0x28] sm:$0xff] (!%p313_p2)  ;;  %v3331_v9 = vmov (!%p313_p2), 0   ;;  %v422_v35 = vld [vmem:[%s3971_s1] sm:$0xff] (!%p313_p2)  ;;  %v424_v36 = vld [vmem:[%s3971_s1 + $0x10] sm:$0xff] (!%p313_p2) }
   0x7   : > { %361 = vst.msk [vmem:[#allocation2] sm:$0x7f] (!%p313_p2), %vm360_vm1, %v3330_v4  ;;  %362 = vst.msk [vmem:[#allocation2 + $0x1f] sm:$0x7f] (!%p313_p2), %vm360_vm1, %v3330_v4  ;;  %3121 = vmatprep.subr.bf16.mxu1 (!%p313_p2), %v3328_v2  ;;  %2900 = vmatprep.mubr.msk.f32.mxu1 (!%p313_p2), %vm3329_vm0, %v3330_v4  ;;  %v423_v43 = vld [vmem:[%s3971_s1 + $0x8] sm:$0xff] (!%p313_p2)  ;;  %vm418_vm2 = vcmask (!%p313_p2), 195584  }
   0x8   : > { %3096 = vmatpush3.bf16.msra.mxu0 (!%p313_p2), %v3095_v3  ;;  %3318 = vset.pattern.permute.xlu0 (!%p313_p2), %v3331_v9  ;;  %v433_v54 = vld [vmem:[%s3972_s2] sm:$0xff] (!%p313_p2)  ;;  %v434_v55 = vld [vmem:[%s3972_s2 + $0x8] sm:$0xff] (!%p313_p2)  ;;  %v435_v60 = vld [vmem:[%s3972_s2 + $0x10] sm:$0xff] (!%p313_p2)  ;;  %vm363_vm3 = vcmask (!%p313_p2), 391168   ;;  %vm1353_vm4 = vcmask (!%p313_p2), 392192   ;;  %vm2299_vm5 = vcmask (!%p313_p2), 261120  }
   0x9   : > { %2757 = vmatprep.subr.mxu0 (!%p313_p2), %v3330_v4  ;;  %3319 = vset.pattern.permute.xlu1 (!%p313_p2), %v3331_v9  ;;  %v3098_v57 = vpack.c.bf16 (!%p313_p2), %v434_v55, %v433_v54  ;;  %v2484_v62 = vld [vmem:[%s3972_s2 + $0x30] sm:$0xff] (!%p313_p2)  ;;  %v2485_v63 = vld [vmem:[%s3972_s2 + $0x38] sm:$0xff] (!%p313_p2)  ;;  %364 = vst.msk [vmem:[#allocation3] sm:$0x7f] (!%p313_p2), %vm363_vm3, %v3330_v4  ;;  %365 = vst.msk [vmem:[#allocation3 + $0x1f] sm:$0x7f] (!%p313_p2), %vm363_vm3, %v3330_v4 }
   0xa   : > { %1337 = vperm.xlu0 (!%p313_p2), %3318, %v422_v35   ;;  %1347 = vperm.xlu1 (!%p313_p2), %3319, %v424_v36   ;;  %v3101_v1 = vpack.c.bf16 (!%p313_p2), %v2485_v63, %v2484_v62  ;;  %v2532_v54 = vld [vmem:[%s3975_s5 + $0x50] sm:$0xff] (!%p313_p2)  ;;  %v2533_v55 = vld [vmem:[%s3975_s5 + $0x58] sm:$0xff] (!%p313_p2) }
   0xc   : > { %2758 = vmatpush3.msra.mxu0 (!%p313_p2), %v2477_v5  ;;  %v2486_v5 = vld [vmem:[%s3972_s2 + $0x40] sm:$0xff] (!%p313_p2) }
   0xd   : > { %s3982_s14 = smov (!%p350_p3, %s2447_s14), 1  ;;  %3097 = vmatprep.subr.bf16.mxu0 %v3328_v2 }
   0xe   : > { %s3304_s21 = smul.u32 192, %s3982_s14  ;;  %1342 = vperm.xlu0 %3318, %v423_v43  }
   0xf   : > { %s3305_s23 = smul.u32 24, %s3982_s14 }
  0x10   : > { %s3419_s24 = scalar_lea.vmem %s3970_s0, %s3304_s21 }
  0x11   : > { %v366_v6 = vld [vmem:[%s3419_s24] sm:$0xff]  ;;  %v2454_v7 = vld [vmem:[%s3419_s24 + $0x18] sm:$0xff]  ;;  %v2457_v8 = vld [vmem:[%s3419_s24 + $0x30] sm:$0xff]  ;;  %s359_s28 = scalar_lea.vmem %s3980_s10, %s3305_s23 }
  0x12   : > { %v373_v10 = vmax.f32 %v366_v6, %v2454_v7  ;;  %v2460_v11 = vld [vmem:[%s3419_s24 + $0x48] sm:$0xff]  ;;  %v2455_v14 = vld [vmem:[%s3419_s24 + $0x20] sm:$0xff]  ;;  %v2458_v15 = vld [vmem:[%s3419_s24 + $0x38] sm:$0xff] }
  0x13   : > { %v367_v12 = vld [vmem:[%s3419_s24 + $0x8] sm:$0xff]  ;;  %v2463_v16 = vld [vmem:[%s3419_s24 + $0x60] sm:$0xff]  ;;  %v2461_v19 = vld [vmem:[%s3419_s24 + $0x50] sm:$0xff] }
  0x14   : > { %v380_v13 = vmax.f32 %v373_v10, %v2457_v8  ;;  %v374_v17 = vmax.f32 %v367_v12, %v2455_v14  ;;  %v368_v20 = vld [vmem:[%s3419_s24 + $0x10] sm:$0xff]  ;;  %v2456_v21 = vld [vmem:[%s3419_s24 + $0x28] sm:$0xff]  ;;  %v2466_v22 = vld [vmem:[%s3419_s24 + $0x78] sm:$0xff] }
  0x15   : > { %v375_v24 = vmax.f32 %v368_v20, %v2456_v21  ;;  %v2459_v25 = vld [vmem:[%s3419_s24 + $0x40] sm:$0xff]  ;;  %v2464_v27 = vld [vmem:[%s3419_s24 + $0x68] sm:$0xff]  ;;  %v2462_v28 = vld [vmem:[%s3419_s24 + $0x58] sm:$0xff] }
  0x16   : > { %v387_v18 = vmax.f32 %v380_v13, %v2460_v11  ;;  %v381_v23 = vmax.f32 %v374_v17, %v2458_v15  ;;  %v2469_v29 = vld [vmem:[%s3419_s24 + $0x90] sm:$0xff]  ;;  %v2467_v31 = vld [vmem:[%s3419_s24 + $0x80] sm:$0xff]  ;;  %v2472_v37 = vld [vmem:[%s3419_s24 + $0xa8] sm:$0xff] }
  0x17   : > { %v382_v32 = vmax.f32 %v375_v24, %v2459_v25  ;;  %v2465_v34 = vld [vmem:[%s3419_s24 + $0x70] sm:$0xff]  ;;  %v2470_v41 = vld [vmem:[%s3419_s24 + $0x98] sm:$0xff]  ;;  %v2468_v42 = vld [vmem:[%s3419_s24 + $0x88] sm:$0xff] }
  0x18   : > { %v394_v26 = vmax.f32 %v387_v18, %v2463_v16  ;;  %v388_v30 = vmax.f32 %v381_v23, %v2461_v19  ;;  %v2473_v47 = vld [vmem:[%s3419_s24 + $0xb0] sm:$0xff]  ;;  %v2471_v48 = vld [vmem:[%s3419_s24 + $0xa0] sm:$0xff]  ;;  %v2474_v51 = vld [vmem:[%s3419_s24 + $0xb8] sm:$0xff] }
  0x19   : > { %v389_v39 = vmax.f32 %v382_v32, %v2462_v28  ;;  %v2490_v7 = vld [vmem:[%s3972_s2 + $0x48] sm:$0xff]  ;;  %v2491_v8 = vld [vmem:[%s3972_s2 + $0x50] sm:$0xff]  ;;  %v2492_v12 = vld [vmem:[%s3972_s2 + $0x58] sm:$0xff] }
  0x1a   : > { %v401_v33 = vmax.f32 %v394_v26, %v2466_v22  ;;  %v395_v38 = vmax.f32 %v388_v30, %v2464_v27  ;;  %v3104_v10 = vpack.c.bf16 %v2491_v8, %v2490_v7  ;;  %v2496_v14 = vld [vmem:[%s3972_s2 + $0x60] sm:$0xff]  ;;  %v2497_v15 = vld [vmem:[%s3972_s2 + $0x68] sm:$0xff]  ;;  %v2498_v19 = vld [vmem:[%s3972_s2 + $0x70] sm:$0xff] }
  0x1b   : > { %v396_v45 = vmax.f32 %v389_v39, %v2465_v34  ;;  %v3107_v17 = vpack.c.bf16 %v2497_v15, %v2496_v14  ;;  %v2502_v21 = vld [vmem:[%s3972_s2 + $0x78] sm:$0xff]  ;;  %v2503_v22 = vld [vmem:[%s3972_s2 + $0x80] sm:$0xff]  ;;  %v2504_v26 = vld [vmem:[%s3972_s2 + $0x88] sm:$0xff] }
  0x1c   : > { %v408_v40 = vmax.f32 %v401_v33, %v2469_v29  ;;  %v402_v44 = vmax.f32 %v395_v38, %v2467_v31  ;;  %v3110_v24 = vpack.c.bf16 %v2503_v22, %v2502_v21  ;;  %v2508_v28 = vld [vmem:[%s3972_s2 + $0x90] sm:$0xff]  ;;  %v2509_v29 = vld [vmem:[%s3972_s2 + $0x98] sm:$0xff]  ;;  %v2510_v31 = vld [vmem:[%s3972_s2 + $0xa0] sm:$0xff] }
  0x1d   : > { %v403_v50 = vmax.f32 %v396_v45, %v2468_v42  ;;  %v3113_v30 = vpack.c.bf16 %v2509_v29, %v2508_v28  ;;  %v2514_v33 = vld [vmem:[%s3972_s2 + $0xa8] sm:$0xff]  ;;  %v2515_v34 = vld [vmem:[%s3972_s2 + $0xb0] sm:$0xff]  ;;  %v2516_v38 = vld [vmem:[%s3972_s2 + $0xb8] sm:$0xff] }
  0x1e   : > { %v415_v46 = vmax.f32 %v408_v40, %v2472_v37  ;;  %v409_v49 = vmax.f32 %v402_v44, %v2470_v41  ;;  %v3116_v36 = vpack.c.bf16 %v2515_v34, %v2514_v33  ;;  %v2520_v40 = vld [vmem:[%s3972_s2 + $0xc0] sm:$0xff]  ;;  %v2521_v41 = vld [vmem:[%s3972_s2 + $0xc8] sm:$0xff]  ;;  %v2522_v45 = vld [vmem:[%s3972_s2 + $0xd0] sm:$0xff] }
  0x1f   : > { %v410_v53 = vmax.f32 %v403_v50, %v2471_v48  ;;  %v3119_v43 = vpack.c.bf16 %v2521_v41, %v2520_v40  ;;  %v2528_v48 = vld [vmem:[%s3975_s5 + $0x30] sm:$0xff]  ;;  %v1364_v28 = vld [vmem:[%s3975_s5 + $0x20] sm:$0xff]  ;;  %v1365_v29 = vld [vmem:[%s3975_s5 + $0x28] sm:$0xff] }
  0x20   : > { %419 = vst.msk [vmem:[#allocation2 + $0x7] sm:$0xff] %vm418_vm2, %v415_v46  ;;  %v416_v52 = vmax.f32 %v409_v49, %v2473_v47  ;;  %v2529_v49 = vld [vmem:[%s3975_s5 + $0x38] sm:$0xff]  ;;  %v2541_v33 = vld [vmem:[%s3975_s5 + $0x68] sm:$0xff]  ;;  %v2544_v40 = vld [vmem:[%s3975_s5 + $0x80] sm:$0xff] }
  0x21   : > { %v417_v56 = vmax.f32 %v410_v53, %v2474_v51  ;;  %v3122_v50 = vpack.c.bf16 %v2529_v49, %v2528_v48  ;;  %v2530_v51 = vld [vmem:[%s3975_s5 + $0x40] sm:$0xff]  ;;  %v2545_v41 = vld [vmem:[%s3975_s5 + $0x88] sm:$0xff] }
  0x22   : > { %420 = vst.msk [vmem:[#allocation2 + $0xf] sm:$0xff] %vm418_vm2, %v416_v52  ;;  %v2531_v52 = vld [vmem:[%s3975_s5 + $0x48] sm:$0xff]  ;;  %v2551_v48 = vld [vmem:[%s3975_s5 + $0xa0] sm:$0xff] }
  0x23   : > { %421 = vst.msk [vmem:[#allocation2 + $0x17] sm:$0xff] %vm418_vm2, %v417_v56  ;;  %3123 = vmatpush3.bf16.msra.mxu1 %v3122_v50  ;;  %v3125_v53 = vpack.c.bf16 %v2531_v52, %v2530_v51  ;;  %v3128_v56 = vpack.c.bf16 %v2533_v55, %v2532_v54  ;;  %v2552_v49 = vld [vmem:[%s3975_s5 + $0xa8] sm:$0xff]  ;;  %v2553_v52 = vld [vmem:[%s3975_s5 + $0xb0] sm:$0xff] }
  0x24   : > { %3124 = vmatprep.subr.bf16.mxu1 %v3328_v2  ;;  %v3152_v51 = vpack.c.bf16 %v2552_v49, %v2551_v48  ;;  %v2598_v48 = vld [vmem:[%s3975_s5 + $0x1a0] sm:$0xff]  ;;  %v2599_v49 = vld [vmem:[%s3975_s5 + $0x1a8] sm:$0xff] }
  0x27   : > { %v436_v58 = vld [vmem:[#allocation2 + $0x1] sm:$0xff]  ;;  %3126 = vmatpush3.bf16.msra.mxu1 %v3125_v53  ;;  %v2554_v53 = vld [vmem:[%s3975_s5 + $0xb8] sm:$0xff] }
  0x28   : > { %2760 = vmatmul.mubr.msk.f32.vlgmr.msra.gmra.mrb[0].mxu0 %vm418_vm2, %v436_v58  ;;  %v430_v0 = vld [vmem:[#allocation2] sm:$0xff]  ;;  %3127 = vmatprep.subr.bf16.mxu1 %v3328_v2  ;;  %v2290_v58 = vld [vmem:[%s3978_s8 + $0x8] sm:$0xff]  ;;  %v3155_v55 = vpack.c.bf16 %v2554_v53, %v2553_v52  ;;  %v2291_v53 = vld [vmem:[%s3978_s8 + $0x10] sm:$0xff] }
  0x29   : > { %3099 = vmatpush3.bf16.msra.mxu0 %v3098_v57  ;;  %2762 = vmatprep.mubr.msk.f32.mxu0 %vm3329_vm0, %v3330_v4  ;;  %v437_v59 = vld [vmem:[#allocation2 + $0x9] sm:$0xff]  ;;  %v2289_v57 = vld [vmem:[%s3978_s8] sm:$0xff] }
  0x2a   : > { %2772 = vmatprep.subr.mxu0 %v3330_v4  ;;  %v438_v61 = vld [vmem:[#allocation2 + $0x11] sm:$0xff]  ;;  %v3487_v3 = vld [vmem:[#allocation2 + $0x8] sm:$0xff]  ;;  %v1019_v39 = vld [vmem:[#allocation2 + $0x1c] sm:$0xff] }
  0x2b   : > { %v3497_v6 = vld [vmem:[#allocation2 + $0x10] sm:$0xff]  ;;  %v621_v9 = vld [vmem:[#allocation2 + $0x2] sm:$0xff]  ;;  %v920_v32 = vld [vmem:[#allocation2 + $0x18] sm:$0xff]  ;;  %3129 = vmatpush3.bf16.msra.mxu1 %v3128_v56 }
  0x2c   : > { %2763 = vmatmul.mubr.msk.f32.gmra.mrb[2].mxu0 %vm418_vm2, %v437_v59  ;;  %v622_v11 = vld [vmem:[#allocation2 + $0xa] sm:$0xff]  ;;  %v623_v13 = vld [vmem:[#allocation2 + $0x12] sm:$0xff]  ;;  %v1118_v46 = vld [vmem:[#allocation2 + $0x1d] sm:$0xff]  ;;  %3130 = vmatprep.subr.bf16.mxu1 %v3328_v2  ;;  %v3203_v59 = vpack.c.bf16 %v2290_v58, %v2289_v57 }
  0x2d   : > { %2773 = vmatpush3.msra.mxu0 %v435_v60  ;;  %2765 = vmatprep.mubr.msk.f32.mxu0 %vm3329_vm0, %v3330_v4  ;;  %v720_v16 = vld [vmem:[#allocation2 + $0x6] sm:$0xff]  ;;  %v3533_v18 = vld [vmem:[#allocation2 + $0xe] sm:$0xff]  ;;  %v3543_v20 = vld [vmem:[#allocation2 + $0x16] sm:$0xff] }
  0x2e   : > { %3100 = vmatprep.subr.bf16.mxu0 %v3328_v2  ;;  %v819_v23 = vld [vmem:[#allocation2 + $0x7] sm:$0xff]  ;;  %v820_v25 = vld [vmem:[#allocation2 + $0xf] sm:$0xff]  ;;  %v821_v27 = vld [vmem:[#allocation2 + $0x17] sm:$0xff] }
  0x2f   : > { %v1017_v35 = vld [vmem:[#allocation2 + $0xc] sm:$0xff]  ;;  %v1018_v37 = vld [vmem:[#allocation2 + $0x14] sm:$0xff]  ;;  %v1217_v47 = vld [vmem:[#allocation2 + $0x1e] sm:$0xff] }
  0x30   : > { %2766 = vmatmul.mubr.msk.f32.gmra.mrb[4].mxu0 %vm418_vm2, %v438_v61  ;;  %v1116_v42 = vld [vmem:[#allocation2 + $0xd] sm:$0xff]  ;;  %v1117_v44 = vld [vmem:[#allocation2 + $0x15] sm:$0xff]  ;;  %v2526_v60 = vld [vmem:[%s3973_s3] ss:$0 sm:$0xff] }
  0x31   : > { %2774 = vmatprep.mubr.msk.f32.mxu0 %vm3329_vm0, %v3330_v4  ;;  %v2527_v61 = vld [vmem:[%s3974_s4] ss:$0 sm:$0xff]  ;;  %v2559_v57 = vld [vmem:[%s3975_s5 + $0xc8] sm:$0xff] }
  0x32   : > { %v2558_v56 = vld [vmem:[%s3975_s5 + $0xc0] sm:$0xff] }
  0x34   : > { %2775 = vmatmul.mubr.msk.f32.vlgmr.msra.gmra.mrb[0].mxu0 %vm418_vm2, %v430_v0 }
  0x35   : > { %3102 = vmatpush3.bf16.msra.mxu0 %v3101_v1  ;;  %2777 = vmatprep.mubr.msk.f32.mxu0 %vm3329_vm0, %v3330_v4 }
  0x36   : > { %2787 = vmatprep.subr.mxu0 %v3330_v4 }
  0x38   : > { %2778 = vmatmul.mubr.msk.f32.gmra.mrb[2].mxu0 %vm418_vm2, %v3487_v3 }
  0x39   : > { %2788 = vmatpush3.msra.mxu0 %v2486_v5  ;;  %2780 = vmatprep.mubr.msk.f32.mxu0 %vm3329_vm0, %v3330_v4 }
  0x3a   : > { %3103 = vmatprep.subr.bf16.mxu0 %v3328_v2 }
  0x3c   : > { %2781 = vmatmul.mubr.msk.f32.gmra.mrb[4].mxu0 %vm418_vm2, %v3497_v6 }
  0x3d   : > { %2789 = vmatprep.mubr.msk.f32.mxu0 %vm3329_vm0, %v3330_v4 }
  0x40   : > { %2790 = vmatmul.mubr.msk.f32.vlgmr.msra.gmra.mrb[0].mxu0 %vm418_vm2, %v621_v9 }
  0x41   : > { %3105 = vmatpush3.bf16.msra.mxu0 %v3104_v10  ;;  %2792 = vmatprep.mubr.msk.f32.mxu0 %vm3329_vm0, %v3330_v4 }
  0x42   : > { %2802 = vmatprep.subr.mxu0 %v3330_v4 }
  0x44   : > { %2793 = vmatmul.mubr.msk.f32.gmra.mrb[2].mxu0 %vm418_vm2, %v622_v11 }
  0x45   : > { %2803 = vmatpush3.msra.mxu0 %v2492_v12  ;;  %2795 = vmatprep.mubr.msk.f32.mxu0 %vm3329_vm0, %v3330_v4 }
  0x46   : > { %3106 = vmatprep.subr.bf16.mxu0 %v3328_v2 }
  0x48   : > { %2796 = vmatmul.mubr.msk.f32.gmra.mrb[4].mxu0 %vm418_vm2, %v623_v13 }
  0x49   : > { %2804 = vmatprep.mubr.msk.f32.mxu0 %vm3329_vm0, %v3330_v4 }
  0x4c   : > { %2805 = vmatmul.mubr.msk.f32.vlgmr.msra.gmra.mrb[0].mxu0 %vm418_vm2, %v720_v16 }
  0x4d   : > { %3108 = vmatpush3.bf16.msra.mxu0 %v3107_v17  ;;  %2807 = vmatprep.mubr.msk.f32.mxu0 %vm3329_vm0, %v3330_v4 }
  0x4e   : > { %2817 = vmatprep.subr.mxu0 %v3330_v4 }
  0x50   : > { %2808 = vmatmul.mubr.msk.f32.gmra.mrb[2].mxu0 %vm418_vm2, %v3533_v18 }
  0x51   : > { %2818 = vmatpush3.msra.mxu0 %v2498_v19  ;;  %2810 = vmatprep.mubr.msk.f32.mxu0 %vm3329_vm0, %v3330_v4  ;;  %v1361_v19 = vld [vmem:[%s3975_s5 + $0x8] sm:$0xff] }
  0x52   : > { %3109 = vmatprep.subr.bf16.mxu0 %v3328_v2 }
  0x54   : > { %2811 = vmatmul.mubr.msk.f32.gmra.mrb[4].mxu0 %vm418_vm2, %v3543_v20 }
  0x55   : > { %2819 = vmatprep.mubr.msk.f32.mxu0 %vm3329_vm0, %v3330_v4 }
  0x58   : > { %2820 = vmatmul.mubr.msk.f32.vlgmr.msra.gmra.mrb[0].mxu0 %vm418_vm2, %v819_v23 }
  0x59   : > { %3111 = vmatpush3.bf16.msra.mxu0 %v3110_v24  ;;  %2822 = vmatprep.mubr.msk.f32.mxu0 %vm3329_vm0, %v3330_v4  ;;  %v1362_v24 = vld [vmem:[%s3975_s5 + $0x10] sm:$0xff] }
  0x5a   : > { %2832 = vmatprep.subr.mxu0 %v3330_v4 }
  0x5c   : > { %2823 = vmatmul.mubr.msk.f32.gmra.mrb[2].mxu0 %vm418_vm2, %v820_v25  ;;  %v1363_v25 = vld [vmem:[%s3975_s5 + $0x18] sm:$0xff] }
  0x5d   : > { %2833 = vmatpush3.msra.mxu0 %v2504_v26  ;;  %2825 = vmatprep.mubr.msk.f32.mxu0 %vm3329_vm0, %v3330_v4 }
  0x5e   : > { %3112 = vmatprep.subr.bf16.mxu0 %v3328_v2 }
  0x60   : > { %2826 = vmatmul.mubr.msk.f32.gmra.mrb[4].mxu0 %vm418_vm2, %v821_v27  ;;  %v3134_v27 = vpack.c.bf16 %v1363_v25, %v1362_v24  ;;  %v2580_v25 = vld [vmem:[%s3975_s5 + $0x140] sm:$0xff] }
  0x61   : > { %2834 = vmatprep.mubr.msk.f32.mxu0 %vm3329_vm0, %v3330_v4 }
  0x64   : > { %2835 = vmatmul.mubr.msk.f32.vlgmr.msra.gmra.mrb[0].mxu0 %vm418_vm2, %v3487_v3 }
  0x65   : > { %3114 = vmatpush3.bf16.msra.mxu0 %v3113_v30  ;;  %2837 = vmatprep.mubr.msk.f32.mxu0 %vm3329_vm0, %v3330_v4 }
  0x66   : > { %2847 = vmatprep.subr.mxu0 %v3330_v4 }
  0x68   : > { %2838 = vmatmul.mubr.msk.f32.gmra.mrb[2].mxu0 %vm418_vm2, %v3497_v6 }
  0x69   : > { %2848 = vmatpush3.msra.mxu0 %v2510_v31  ;;  %2840 = vmatprep.mubr.msk.f32.mxu0 %vm3329_vm0, %v3330_v4  ;;  %v3137_v31 = vpack.c.bf16 %v1365_v29, %v1364_v28  ;;  %v2585_v28 = vld [vmem:[%s3975_s5 + $0x150] sm:$0xff]  ;;  %v2586_v29 = vld [vmem:[%s3975_s5 + $0x158] sm:$0xff] }
  0x6a   : > { %3115 = vmatprep.subr.bf16.mxu0 %v3328_v2 }
  0x6c   : > { %2841 = vmatmul.mubr.msk.f32.gmra.mrb[4].mxu0 %vm418_vm2, %v920_v32  ;;  %v2540_v32 = vld [vmem:[%s3975_s5 + $0x60] sm:$0xff] }
  0x6d   : > { %2849 = vmatprep.mubr.msk.f32.mxu0 %vm3329_vm0, %v3330_v4 }
  0x70   : > { %2850 = vmatmul.mubr.msk.f32.vlgmr.msra.gmra.mrb[0].mxu0 %vm418_vm2, %v1017_v35  ;;  %v3140_v35 = vpack.c.bf16 %v2541_v33, %v2540_v32  ;;  %v2587_v32 = vld [vmem:[%s3975_s5 + $0x160] sm:$0xff]  ;;  %v2588_v33 = vld [vmem:[%s3975_s5 + $0x168] sm:$0xff] }
  0x71   : > { %3117 = vmatpush3.bf16.msra.mxu0 %v3116_v36  ;;  %2852 = vmatprep.mubr.msk.f32.mxu0 %vm3329_vm0, %v3330_v4  ;;  %v2542_v36 = vld [vmem:[%s3975_s5 + $0x70] sm:$0xff] }
  0x72   : > { %2862 = vmatprep.subr.mxu0 %v3330_v4 }
  0x74   : > { %2853 = vmatmul.mubr.msk.f32.gmra.mrb[2].mxu0 %vm418_vm2, %v1018_v37  ;;  %v2543_v37 = vld [vmem:[%s3975_s5 + $0x78] sm:$0xff] }
  0x75   : > { %2863 = vmatpush3.msra.mxu0 %v2516_v38  ;;  %2855 = vmatprep.mubr.msk.f32.mxu0 %vm3329_vm0, %v3330_v4 }
  0x76   : > { %3118 = vmatprep.subr.bf16.mxu0 %v3328_v2 }
  0x78   : > { %2856 = vmatmul.mubr.msk.f32.gmra.mrb[4].mxu0 %vm418_vm2, %v1019_v39  ;;  %v3143_v39 = vpack.c.bf16 %v2543_v37, %v2542_v36  ;;  %v2589_v36 = vld [vmem:[%s3975_s5 + $0x170] sm:$0xff]  ;;  %v2590_v37 = vld [vmem:[%s3975_s5 + $0x178] sm:$0xff] }
  0x79   : > { %2864 = vmatprep.mubr.msk.f32.mxu0 %vm3329_vm0, %v3330_v4 }
  0x7c   : > { %2865 = vmatmul.mubr.msk.f32.vlgmr.msra.gmra.mrb[0].mxu0 %vm418_vm2, %v1116_v42 }
  0x7d   : > { %3120 = vmatpush3.bf16.msra.mxu0 %v3119_v43  ;;  %2867 = vmatprep.mubr.msk.f32.mxu0 %vm3329_vm0, %v3330_v4  ;;  %v3146_v43 = vpack.c.bf16 %v2545_v41, %v2544_v40  ;;  %v2594_v40 = vld [vmem:[%s3975_s5 + $0x180] sm:$0xff]  ;;  %v2595_v41 = vld [vmem:[%s3975_s5 + $0x188] sm:$0xff] }
  0x7e   : > { %2877 = vmatprep.subr.mxu0 %v3330_v4 }
  0x80   : > { %2868 = vmatmul.mubr.msk.f32.gmra.mrb[2].mxu0 %vm418_vm2, %v1117_v44  ;;  %v2549_v44 = vld [vmem:[%s3975_s5 + $0x90] sm:$0xff] }
  0x81   : > { %2878 = vmatpush3.msra.mxu0 %v2522_v45  ;;  %2870 = vmatprep.mubr.msk.f32.mxu0 %vm3329_vm0, %v3330_v4  ;;  %v2550_v45 = vld [vmem:[%s3975_s5 + $0x98] sm:$0xff] }
  0x82   : > { %3202 = vmatprep.subr.bf16.mxu0 %v3328_v2 }
  0x84   : > { %2871 = vmatmul.mubr.msk.f32.gmra.mrb[4].mxu0 %vm418_vm2, %v1118_v46 }
  0x85   : > { %2879 = vmatprep.mubr.msk.f32.mxu0 %vm3329_vm0, %v3330_v4 }
  0x88   : > { %2880 = vmatmul.mubr.msk.f32.vlgmr.msra.gmra.mrb[0].mxu0 %vm418_vm2, %v3533_v18  ;;  %v1360_v18 = vld [vmem:[%s3975_s5] sm:$0xff] }
  0x89   : > { %2882 = vmatprep.mubr.msk.f32.mxu0 %vm3329_vm0, %v3330_v4  ;;  %3204 = vmatpush3.bf16.msra.mxu0 %v3203_v59  ;;  %v1338_v3 = vpop.permute.xlu0 %1337  ;;  %v3131_v22 = vpack.c.bf16 %v1361_v19, %v1360_v18  ;;  %v3158_v59 = vpack.c.bf16 %v2559_v57, %v2558_v56  ;;  %v2576_v18 = vld [vmem:[%s3975_s5 + $0x120] sm:$0xff]  ;;  %v2577_v19 = vld [vmem:[%s3975_s5 + $0x128] sm:$0xff] }
  0x8a   : > { %3205 = vmatprep.subr.bf16.mxu0 %v3328_v2  ;;  %v2603_v56 = vld [vmem:[%s3976_s6] ss:$0 sm:$0xff] }
  0x8b   : > { %v2604_v57 = vld [vmem:[%s3977_s7] ss:$0 sm:$0xff] }
  0x8c   : > { %2883 = vmatmul.mubr.msk.f32.gmra.mrb[2].mxu0 %vm418_vm2, %v3543_v20  ;;  %v1348_v20 = vpop.permute.xlu1 %1347 }
  0x8d   : > { %2885 = vmatprep.mubr.msk.f32.mxu0 %vm3329_vm0, %v3330_v4  ;;  %v1343_v15 = vpop.permute.xlu0 %1342 }
  0x90   : > { %2886 = vmatmul.mubr.msk.f32.gmra.mrb[4].mxu0 %vm418_vm2, %v1217_v47  ;;  %v3149_v47 = vpack.c.bf16 %v2550_v45, %v2549_v44  ;;  %v2596_v44 = vld [vmem:[%s3975_s5 + $0x190] sm:$0xff]  ;;  %v2597_v45 = vld [vmem:[%s3975_s5 + $0x198] sm:$0xff] }
  0x91   : > { %3085 = vmatprep.mubr.msk.f32.mxu0 %vm3329_vm0, %v3330_v4 }
 0x15b   : > { %v1297_v62 = vpop.f32.mrb[0].mxu0 }
 0x15c   : > { %v1320_v63 = vmul.f32 %v2526_v60, %v1297_v62  ;;  %v2881_v0 = vpop.f32.mrb[1].mxu0 }
 0x15d   : > { %v2562_v0 = vld [vmem:[%s3975_s5 + $0xe0] sm:$0xff] }
 0x15e   : > { %v1329_v1 = vadd.f32 %v2527_v61, %v1320_v63 }
 0x15f   : > { %v1302_v5 = vpop.f32.mrb[2].mxu0 }
 0x160   : > { %v1332_v6 = vmax.f32 %v1329_v1, 0.0  ;;  %v1321_v7 = vmul.f32 %v2526_v60, %v1302_v5  ;;  %v2884_v8 = vpop.f32.mrb[3].mxu0  ;;  %v2563_v1 = vld [vmem:[%s3975_s5 + $0xe8] sm:$0xff] }
 0x161   : > { %v3164_v5 = vpack.c.bf16 %v2563_v1, %v2562_v0 }
 0x162   : > { %v1350_v9 = vmul.f32 %v1338_v3, %v1332_v6  ;;  %v1330_v10 = vadd.f32 %v2527_v61, %v1321_v7  ;;  %v2567_v6 = vld [vmem:[%s3975_s5 + $0xf0] sm:$0xff]  ;;  %v2568_v7 = vld [vmem:[%s3975_s5 + $0xf8] sm:$0xff] }
 0x163   : > { %v1307_v11 = vpop.f32.mrb[4].mxu0 }
 0x164   : > { %1354 = vst.msk [vmem:[#allocation3 + $0x7] sm:$0xff] %vm1353_vm4, %v1350_v9  ;;  %v1333_v12 = vmax.f32 %v1330_v10, 0.0  ;;  %v1322_v13 = vmul.f32 %v2526_v60, %v1307_v11  ;;  %v2887_v14 = vpop.f32.mrb[5].mxu0  ;;  %v2560_v60 = vld [vmem:[%s3975_s5 + $0xd0] sm:$0xff]  ;;  %v3167_v9 = vpack.c.bf16 %v2568_v7, %v2567_v6  ;;  %v2569_v10 = vld [vmem:[%s3975_s5 + $0x100] sm:$0xff]  ;;  %v2570_v11 = vld [vmem:[%s3975_s5 + $0x108] sm:$0xff] }
 0x165   : > { %v2571_v14 = vld [vmem:[%s3975_s5 + $0x110] sm:$0xff] }
 0x166   : > { %v1351_v16 = vmul.f32 %v1343_v15, %v1333_v12  ;;  %v1331_v17 = vadd.f32 %v2527_v61, %v1322_v13  ;;  %v2561_v61 = vld [vmem:[%s3975_s5 + $0xd8] sm:$0xff]  ;;  %v3170_v13 = vpack.c.bf16 %v2570_v11, %v2569_v10  ;;  %v2605_v11 = vld [vmem:[%s3979_s9] ss:$0 sm:$0xff] }
 0x167   : > { %v3161_v63 = vpack.c.bf16 %v2561_v61, %v2560_v60  ;;  %v2572_v15 = vld [vmem:[%s3975_s5 + $0x118] sm:$0xff] }
 0x168   : > { %1355 = vst.msk [vmem:[#allocation3 + $0xf] sm:$0xff] %vm1353_vm4, %v1351_v16  ;;  %v1334_v21 = vmax.f32 %v1331_v17, 0.0  ;;  %v3173_v17 = vpack.c.bf16 %v2572_v15, %v2571_v14 }
 0x16a   : > { %v1352_v23 = vmul.f32 %v1348_v20, %v1334_v21  ;;  %v3176_v21 = vpack.c.bf16 %v2577_v19, %v2576_v18 }
 0x16b   : > { %v1366_v26 = vld [vmem:[#allocation3 + $0x1] sm:$0xff] }
 0x16c   : > { %1356 = vst.msk [vmem:[#allocation3 + $0x17] sm:$0xff] %vm1353_vm4, %v1352_v23  ;;  %2901 = vmatmul.mubr.msk.f32.vlgmr.msra.gmra.mrb[0].mxu1 %vm1353_vm4, %v1366_v26  ;;  %v1357_v38 = vld [vmem:[#allocation3] sm:$0xff]  ;;  %v2579_v23 = vld [vmem:[%s3975_s5 + $0x138] sm:$0xff] }
 0x16d   : > { %3132 = vmatpush3.bf16.msra.mxu1 %v3131_v22  ;;  %2903 = vmatprep.mubr.msk.f32.mxu1 %vm3329_vm0, %v3330_v4  ;;  %v1554_v50 = vld [vmem:[#allocation3 + $0x2] sm:$0xff] }
 0x16e   : > { %3133 = vmatprep.subr.bf16.mxu1 %v3328_v2  ;;  %v1656_v62 = vld [vmem:[#allocation3 + $0x6] sm:$0xff] }
 0x16f   : > { %v1367_v30 = vld [vmem:[#allocation3 + $0x9] sm:$0xff]  ;;  %v2581_v26 = vld [vmem:[%s3975_s5 + $0x148] sm:$0xff] }
 0x170   : > { %2904 = vmatmul.mubr.msk.f32.gmra.mrb[2].mxu1 %vm1353_vm4, %v1367_v30  ;;  %v3734_v42 = vld [vmem:[#allocation3 + $0x8] sm:$0xff] }
 0x171   : > { %3135 = vmatpush3.bf16.msra.mxu1 %v3134_v27  ;;  %2906 = vmatprep.mubr.msk.f32.mxu1 %vm3329_vm0, %v3330_v4  ;;  %v1555_v54 = vld [vmem:[#allocation3 + $0xa] sm:$0xff]  ;;  %v3182_v27 = vpack.c.bf16 %v2581_v26, %v2580_v25 }
 0x172   : > { %3136 = vmatprep.subr.bf16.mxu1 %v3328_v2  ;;  %v3800_v3 = vld [vmem:[#allocation3 + $0xe] sm:$0xff] }
 0x173   : > { %v1368_v34 = vld [vmem:[#allocation3 + $0x11] sm:$0xff]  ;;  %v1758_v12 = vld [vmem:[#allocation3 + $0x7] sm:$0xff]  ;;  %v2066_v52 = vld [vmem:[#allocation3 + $0x1d] sm:$0xff] }
 0x174   : > { %2907 = vmatmul.mubr.msk.f32.gmra.mrb[4].mxu1 %vm1353_vm4, %v1368_v34  ;;  %v3747_v46 = vld [vmem:[#allocation3 + $0x10] sm:$0xff]  ;;  %v2578_v22 = vld [vmem:[%s3975_s5 + $0x130] sm:$0xff]  ;;  %v1862_v30 = vld [vmem:[#allocation3 + $0x18] sm:$0xff] }
 0x175   : > { %3138 = vmatpush3.bf16.msra.mxu1 %v3137_v31  ;;  %2921 = vmatprep.mubr.msk.f32.mxu1 %vm3329_vm0, %v3330_v4  ;;  %v1556_v58 = vld [vmem:[#allocation3 + $0x12] sm:$0xff]  ;;  %v3179_v24 = vpack.c.bf16 %v2579_v23, %v2578_v22  ;;  %v3185_v31 = vpack.c.bf16 %v2586_v29, %v2585_v28 }
 0x176   : > { %3139 = vmatprep.subr.bf16.mxu1 %v3328_v2  ;;  %v3813_v8 = vld [vmem:[#allocation3 + $0x16] sm:$0xff]  ;;  %v1962_v34 = vld [vmem:[#allocation3 + $0xc] sm:$0xff] }
 0x177   : > { %v1759_v16 = vld [vmem:[#allocation3 + $0xf] sm:$0xff]  ;;  %v1760_v20 = vld [vmem:[#allocation3 + $0x17] sm:$0xff] }
 0x178   : > { %2922 = vmatmul.mubr.msk.f32.vlgmr.msra.gmra.mrb[0].mxu1 %vm1353_vm4, %v1357_v38  ;;  %v1963_v38 = vld [vmem:[#allocation3 + $0x14] sm:$0xff] }
 0x179   : > { %3141 = vmatpush3.bf16.msra.mxu1 %v3140_v35  ;;  %2924 = vmatprep.mubr.msk.f32.mxu1 %vm3329_vm0, %v3330_v4  ;;  %v3188_v35 = vpack.c.bf16 %v2588_v33, %v2587_v32 }
 0x17a   : > { %3142 = vmatprep.subr.bf16.mxu1 %v3328_v2 }
 0x17c   : > { %2925 = vmatmul.mubr.msk.f32.gmra.mrb[2].mxu1 %vm1353_vm4, %v3734_v42 }
 0x17d   : > { %3144 = vmatpush3.bf16.msra.mxu1 %v3143_v39  ;;  %2927 = vmatprep.mubr.msk.f32.mxu1 %vm3329_vm0, %v3330_v4  ;;  %v3191_v39 = vpack.c.bf16 %v2590_v37, %v2589_v36 }
 0x17e   : > { %3145 = vmatprep.subr.bf16.mxu1 %v3328_v2 }
 0x180   : > { %2928 = vmatmul.mubr.msk.f32.gmra.mrb[4].mxu1 %vm1353_vm4, %v3747_v46 }
 0x181   : > { %3147 = vmatpush3.bf16.msra.mxu1 %v3146_v43  ;;  %2942 = vmatprep.mubr.msk.f32.mxu1 %vm3329_vm0, %v3330_v4  ;;  %v3194_v43 = vpack.c.bf16 %v2595_v41, %v2594_v40 }
 0x182   : > { %3148 = vmatprep.subr.bf16.mxu1 %v3328_v2 }
 0x184   : > { %2943 = vmatmul.mubr.msk.f32.vlgmr.msra.gmra.mrb[0].mxu1 %vm1353_vm4, %v1554_v50  ;;  %v2065_v50 = vld [vmem:[#allocation3 + $0x15] sm:$0xff] }
 0x185   : > { %3150 = vmatpush3.bf16.msra.mxu1 %v3149_v47  ;;  %2945 = vmatprep.mubr.msk.f32.mxu1 %vm3329_vm0, %v3330_v4  ;;  %v3197_v47 = vpack.c.bf16 %v2597_v45, %v2596_v44 }
 0x186   : > { %3151 = vmatprep.subr.bf16.mxu1 %v3328_v2 }
 0x188   : > { %2946 = vmatmul.mubr.msk.f32.gmra.mrb[2].mxu1 %vm1353_vm4, %v1555_v54  ;;  %v2292_v54 = vld [vmem:[%s3978_s8 + $0x18] sm:$0xff] }
 0x189   : > { %3153 = vmatpush3.bf16.msra.mxu1 %v3152_v51  ;;  %2948 = vmatprep.mubr.msk.f32.mxu1 %vm3329_vm0, %v3330_v4  ;;  %v3200_v51 = vpack.c.bf16 %v2599_v49, %v2598_v48 }
 0x18a   : > { %3154 = vmatprep.subr.bf16.mxu1 %v3328_v2 }
 0x18c   : > { %2949 = vmatmul.mubr.msk.f32.gmra.mrb[4].mxu1 %vm1353_vm4, %v1556_v58 }
 0x18d   : > { %3156 = vmatpush3.bf16.msra.mxu1 %v3155_v55  ;;  %2963 = vmatprep.mubr.msk.f32.mxu1 %vm3329_vm0, %v3330_v4  ;;  %v3206_v55 = vpack.c.bf16 %v2292_v54, %v2291_v53 }
 0x18e   : > { %3157 = vmatprep.subr.bf16.mxu1 %v3328_v2 }
 0x18f   : > { %3207 = vmatpush3.bf16.msra.mxu0 %v3206_v55 }
 0x190   : > { %2964 = vmatmul.mubr.msk.f32.vlgmr.msra.gmra.mrb[0].mxu1 %vm1353_vm4, %v1656_v62 }
 0x191   : > { %3159 = vmatpush3.bf16.msra.mxu1 %v3158_v59  ;;  %2966 = vmatprep.mubr.msk.f32.mxu1 %vm3329_vm0, %v3330_v4 }
 0x192   : > { %3160 = vmatprep.subr.bf16.mxu1 %v3328_v2 }
 0x194   : > { %2967 = vmatmul.mubr.msk.f32.gmra.mrb[2].mxu1 %vm1353_vm4, %v3800_v3 }
 0x195   : > { %3162 = vmatpush3.bf16.msra.mxu1 %v3161_v63  ;;  %2969 = vmatprep.mubr.msk.f32.mxu1 %vm3329_vm0, %v3330_v4 }
 0x196   : > { %3163 = vmatprep.subr.bf16.mxu1 %v3328_v2 }
 0x198   : > { %2970 = vmatmul.mubr.msk.f32.gmra.mrb[4].mxu1 %vm1353_vm4, %v3813_v8 }
 0x199   : > { %3165 = vmatpush3.bf16.msra.mxu1 %v3164_v5  ;;  %2984 = vmatprep.mubr.msk.f32.mxu1 %vm3329_vm0, %v3330_v4 }
 0x19a   : > { %3166 = vmatprep.subr.bf16.mxu1 %v3328_v2 }
 0x19c   : > { %2985 = vmatmul.mubr.msk.f32.vlgmr.msra.gmra.mrb[0].mxu1 %vm1353_vm4, %v1758_v12 }
 0x19d   : > { %3168 = vmatpush3.bf16.msra.mxu1 %v3167_v9  ;;  %2987 = vmatprep.mubr.msk.f32.mxu1 %vm3329_vm0, %v3330_v4 }
 0x19e   : > { %3169 = vmatprep.subr.bf16.mxu1 %v3328_v2 }
 0x1a0   : > { %2988 = vmatmul.mubr.msk.f32.gmra.mrb[2].mxu1 %vm1353_vm4, %v1759_v16 }
 0x1a1   : > { %3171 = vmatpush3.bf16.msra.mxu1 %v3170_v13  ;;  %2990 = vmatprep.mubr.msk.f32.mxu1 %vm3329_vm0, %v3330_v4 }
 0x1a2   : > { %3172 = vmatprep.subr.bf16.mxu1 %v3328_v2 }
 0x1a4   : > { %2991 = vmatmul.mubr.msk.f32.gmra.mrb[4].mxu1 %vm1353_vm4, %v1760_v20 }
 0x1a5   : > { %3174 = vmatpush3.bf16.msra.mxu1 %v3173_v17  ;;  %3005 = vmatprep.mubr.msk.f32.mxu1 %vm3329_vm0, %v3330_v4 }
 0x1a6   : > { %3175 = vmatprep.subr.bf16.mxu1 %v3328_v2 }
 0x1a8   : > { %3006 = vmatmul.mubr.msk.f32.vlgmr.msra.gmra.mrb[0].mxu1 %vm1353_vm4, %v3734_v42  ;;  %v1964_v42 = vld [vmem:[#allocation3 + $0x1c] sm:$0xff] }
 0x1a9   : > { %3177 = vmatpush3.bf16.msra.mxu1 %v3176_v21  ;;  %3008 = vmatprep.mubr.msk.f32.mxu1 %vm3329_vm0, %v3330_v4 }
 0x1aa   : > { %3178 = vmatprep.subr.bf16.mxu1 %v3328_v2 }
 0x1ac   : > { %3009 = vmatmul.mubr.msk.f32.gmra.mrb[2].mxu1 %vm1353_vm4, %v3747_v46  ;;  %v2064_v46 = vld [vmem:[#allocation3 + $0xd] sm:$0xff] }
 0x1ad   : > { %3180 = vmatpush3.bf16.msra.mxu1 %v3179_v24  ;;  %3011 = vmatprep.mubr.msk.f32.mxu1 %vm3329_vm0, %v3330_v4 }
 0x1ae   : > { %3181 = vmatprep.subr.bf16.mxu1 %v3328_v2 }
 0x1b0   : > { %3012 = vmatmul.mubr.msk.f32.gmra.mrb[4].mxu1 %vm1353_vm4, %v1862_v30 }
 0x1b1   : > { %3183 = vmatpush3.bf16.msra.mxu1 %v3182_v27  ;;  %3026 = vmatprep.mubr.msk.f32.mxu1 %vm3329_vm0, %v3330_v4 }
 0x1b2   : > { %3184 = vmatprep.subr.bf16.mxu1 %v3328_v2 }
 0x1b4   : > { %3027 = vmatmul.mubr.msk.f32.vlgmr.msra.gmra.mrb[0].mxu1 %vm1353_vm4, %v1962_v34 }
 0x1b5   : > { %3186 = vmatpush3.bf16.msra.mxu1 %v3185_v31  ;;  %3029 = vmatprep.mubr.msk.f32.mxu1 %vm3329_vm0, %v3330_v4 }
 0x1b6   : > { %3187 = vmatprep.subr.bf16.mxu1 %v3328_v2 }
 0x1b8   : > { %3030 = vmatmul.mubr.msk.f32.gmra.mrb[2].mxu1 %vm1353_vm4, %v1963_v38 }
 0x1b9   : > { %3189 = vmatpush3.bf16.msra.mxu1 %v3188_v35  ;;  %3032 = vmatprep.mubr.msk.f32.mxu1 %vm3329_vm0, %v3330_v4 }
 0x1ba   : > { %3190 = vmatprep.subr.bf16.mxu1 %v3328_v2 }
 0x1bc   : > { %3033 = vmatmul.mubr.msk.f32.gmra.mrb[4].mxu1 %vm1353_vm4, %v1964_v42 }
 0x1bd   : > { %3192 = vmatpush3.bf16.msra.mxu1 %v3191_v39  ;;  %3047 = vmatprep.mubr.msk.f32.mxu1 %vm3329_vm0, %v3330_v4 }
 0x1be   : > { %3193 = vmatprep.subr.bf16.mxu1 %v3328_v2 }
 0x1c0   : > { %3048 = vmatmul.mubr.msk.f32.vlgmr.msra.gmra.mrb[0].mxu1 %vm1353_vm4, %v2064_v46 }
 0x1c1   : > { %3195 = vmatpush3.bf16.msra.mxu1 %v3194_v43  ;;  %3050 = vmatprep.mubr.msk.f32.mxu1 %vm3329_vm0, %v3330_v4 }
 0x1c2   : > { %3196 = vmatprep.subr.bf16.mxu1 %v3328_v2 }
 0x1c4   : > { %3051 = vmatmul.mubr.msk.f32.gmra.mrb[2].mxu1 %vm1353_vm4, %v2065_v50 }
 0x1c5   : > { %3198 = vmatpush3.bf16.msra.mxu1 %v3197_v47  ;;  %3053 = vmatprep.mubr.msk.f32.mxu1 %vm3329_vm0, %v3330_v4 }
 0x1c6   : > { %3199 = vmatprep.subr.bf16.mxu1 %v3328_v2  ;;  %v2168_v2 = vld [vmem:[#allocation3 + $0x1e] sm:$0xff] }
 0x1c8   : > { %3054 = vmatmul.mubr.msk.f32.gmra.mrb[4].mxu1 %vm1353_vm4, %v2066_v52 }
 0x1c9   : > { %3201 = vmatpush3.bf16.msra.mxu1 %v3200_v51  ;;  %3068 = vmatprep.mubr.msk.f32.mxu1 %vm3329_vm0, %v3330_v4 }
 0x1cc   : > { %3069 = vmatmul.mubr.msk.f32.vlgmr.msra.gmra.mrb[0].mxu1 %vm1353_vm4, %v3800_v3 }
 0x1cd   : > { %3071 = vmatprep.mubr.msk.f32.mxu1 %vm3329_vm0, %v3330_v4 }
 0x1d0   : > { %3072 = vmatmul.mubr.msk.f32.gmra.mrb[2].mxu1 %vm1353_vm4, %v3813_v8 }
 0x1d1   : > { %3074 = vmatprep.mubr.msk.f32.mxu1 %vm3329_vm0, %v3330_v4 }
 0x1d4   : > { %3075 = vmatmul.mubr.msk.f32.gmra.mrb[4].mxu1 %vm1353_vm4, %v2168_v2 }
 0x29f   : > { %v2251_v58 = vpop.f32.mrb[0].mxu1 }
 0x2a0   : > { %v2274_v59 = vmul.f32 %v2603_v56, %v2251_v58  ;;  %v3070_v60 = vpop.f32.mrb[1].mxu1 }
 0x2a2   : > { %v2283_v61 = vadd.f32 %v2604_v57, %v2274_v59 }
 0x2a3   : > { %v2256_v62 = vpop.f32.mrb[2].mxu1 }
 0x2a4   : > { %v2286_v63 = vmax.f32 %v2283_v61, 0.0  ;;  %v2275_v0 = vmul.f32 %v2603_v56, %v2256_v62  ;;  %v3073_v1 = vpop.f32.mrb[3].mxu1 }
 0x2a6   : > { %v2284_v3 = vadd.f32 %v2604_v57, %v2275_v0  ;;  %3086 = vmatmul.mubr.msk.f32.vlgmr.msra.gmra.mrb[6].mxu0 %vm2299_vm5, %v2286_v63 }
 0x2a7   : > { %v2261_v5 = vpop.f32.mrb[4].mxu1  ;;  %3088 = vmatprep.mubr.msk.f32.mxu0 %vm3329_vm0, %v3330_v4 }
 0x2a8   : > { %v2287_v6 = vmax.f32 %v2284_v3, 0.0  ;;  %v2276_v7 = vmul.f32 %v2603_v56, %v2261_v5  ;;  %v3076_v8 = vpop.f32.mrb[5].mxu1 }
 0x2aa   : > { %v2285_v9 = vadd.f32 %v2604_v57, %v2276_v7  ;;  %3089 = vmatmul.mubr.msk.f32.gmra.mrb[8].mxu0 %vm2299_vm5, %v2287_v6 }
 0x2ab   : > { %3091 = vmatprep.mubr.msk.f32.mxu0 %vm3329_vm0, %v3330_v4 }
 0x2ac   : > { %v2288_v10 = vmax.f32 %v2285_v9, 0.0 }
 0x2ae   : > { %3092 = vmatmul.mubr.msk.f32.gmra.mrb[10].mxu0 %vm2299_vm5, %v2288_v10 }
 0x379   : > { %v2375_v12 = vpop.f32.mrb[6].mxu0 }
 0x37a   : > { %v2376_v13 = vadd.f32 %v2605_v11, %v2375_v12  ;;  %v3087_v14 = vpop.f32.mrb[7].mxu0 }
 0x37c   : > { %2389 = vst [vmem:[%s359_s28] sm:$0xff] %v2376_v13 }
 0x37d   : > { %v2380_v15 = vpop.f32.mrb[8].mxu0 }
 0x37e   : > { %v2381_v16 = vadd.f32 %v2605_v11, %v2380_v15  ;;  %v3090_v17 = vpop.f32.mrb[9].mxu0 }
 0x380   : > { %2390 = vst [vmem:[%s359_s28 + $0x8] sm:$0xff] %v2381_v16 }
 0x381   : > { %v2385_v4 = vpop.f32.mrb[10].mxu0 }
 0x382   : > { %v2386_v18 = vadd.f32 %v2605_v11, %v2385_v4  ;;  %v3093_v19 = vpop.f32.mrb[11].mxu0 }
 0x384   : > { %2391 = vst [vmem:[%s359_s28 + $0x10] sm:$0xff] %v2386_v18 }
 0x385 PF: > { %s20_s13 = sadd.s32 1, %s3326_s13  }
 0x386   : > { %p17_p4 = scmp.ge.s32.totalorder %s20_s13, 4  }
 0x388   :  { %19 = sbr.rel (!%p17_p4) target bundleno = 1 (0x1), region = 113 }

</bundles_post_ra>
